<compile_context>
chip_gen: v7x
topology: tpu7x:2x2x1
jax: 0.10.0
libtpu: 0.0.40
codegen_flags: <defaults>
</compile_context>

<pallas_src>
import jax
import jax.numpy as jnp
from jax.experimental import pallas as pl
from jax.experimental.pallas import tpu as pltpu


# Row indices inside the packed per-layer vector block (L, 8, W).
_LN1G, _LN1B, _BQKV, _BO, _LN2G, _LN2B, _B1, _B2 = range(8)


# ---------------------------------------------------------------------------
# Kernel factory: one transformer layer per depth grid step, activation
# resident in the output block across the depth axis.
# ---------------------------------------------------------------------------
def make_transformer_kernel(dim, heads, hidden_dim, seq_len, batch_tile):
    head_dim = dim // heads
    scale = dim ** (-0.5)            # full-dim scaling, per the module
    eps = 1e-5                       # nn.LayerNorm default
    inv_sqrt2 = 1.0 / (2.0 ** 0.5)
    Bt = batch_tile
    BtN = Bt * seq_len
    H = heads

    def layer_norm(z, g, b):
        mu = jnp.mean(z, axis=-1, keepdims=True)
        var = jnp.mean(jnp.square(z - mu), axis=-1, keepdims=True)
        return (z - mu) * jax.lax.rsqrt(var + eps) * g + b

    def kernel(x_ref, wqkv_ref, wo_ref, w1_ref, w2_ref, vec_ref, y_ref):
        # Output block index is constant along the depth grid axis, so y_ref
        # is the VMEM-resident activation carried across layers.
        @pl.when(pl.program_id(1) == 0)
        def _():
            y_ref[...] = x_ref[...]

        vec = vec_ref[0]                                    # (8, W) f32
        ln1g = vec[_LN1G:_LN1G + 1, :dim]
        ln1b = vec[_LN1B:_LN1B + 1, :dim]
        bqkv = vec[_BQKV:_BQKV + 1, :3 * dim]
        bo = vec[_BO:_BO + 1, :dim]
        ln2g = vec[_LN2G:_LN2G + 1, :dim]
        ln2b = vec[_LN2B:_LN2B + 1, :dim]
        b1 = vec[_B1:_B1 + 1, :hidden_dim]
        b2 = vec[_B2:_B2 + 1, :dim]

        # Flatten the batch tile: all dense matmuls run on (Bt*N, *) slabs.
        x = y_ref[...].astype(jnp.float32).reshape(BtN, dim)

        # ---------------- Residual(LayerNorm -> Attention) ----------------
        xn = layer_norm(x, ln1g, ln1b)                      # (BtN, D) f32
        wqkv = wqkv_ref[0]                                  # (D, 3D)
        qkv = jnp.dot(xn.astype(wqkv.dtype), wqkv,
                      preferred_element_type=jnp.float32) + bqkv   # (BtN, 3D)

        def split_heads(offset):
            # Static lane slices per head, regrouped to (H*Bt, N, hd) with a
            # single leading batch dim (the supported batched-matmul form).
            return jnp.stack(
                [qkv[:, offset + h * head_dim: offset + (h + 1) * head_dim]
                     .reshape(Bt, seq_len, head_dim) for h in range(H)],
                axis=0).reshape(H * Bt, seq_len, head_dim)

        q = split_heads(0)
        k = split_heads(dim)
        v = split_heads(2 * dim)

        dots = jnp.einsum('bqd,bkd->bqk', q, k,
                          preferred_element_type=jnp.float32) * scale
        dots = dots - jnp.max(dots, axis=-1, keepdims=True)
        p = jnp.exp(dots)
        denom = jnp.sum(p, axis=-1, keepdims=True)
        # EUP approximate reciprocal + one Newton step: f32-accurate and keeps
        # the divide off the VALU slots.
        inv = pl.reciprocal(denom, approx=True)
        inv = inv * (2.0 - denom * inv)
        p = p * inv

        o = jnp.einsum('bqk,bkd->bqd', p, v,
                       preferred_element_type=jnp.float32)  # (H*Bt, N, hd)
        # Merge heads back to (Bt*N, D): cheap O(N*D) lane regroup, then one
        # dense D-deep output projection (no per-head matmuls / head sum).
        o = jnp.concatenate(
            [o[h * Bt:(h + 1) * Bt].reshape(BtN, head_dim) for h in range(H)],
            axis=-1)                                        # (BtN, D)
        wo = wo_ref[0]                                      # (D, D)
        attn = jnp.dot(o.astype(wo.dtype), wo,
                       preferred_element_type=jnp.float32) + bo
        x = x + attn                                        # residual 1

        # ---------------- Residual(LayerNorm -> MLP) ----------------------
        xn2 = layer_norm(x, ln2g, ln2b)
        w1 = w1_ref[0]                                      # (D, hidden)
        w2 = w2_ref[0]                                      # (hidden, D)
        h1 = jnp.dot(xn2.astype(w1.dtype), w1,
                     preferred_element_type=jnp.float32) + b1
        # Exact GELU (erf) for parity with nn.GELU; on v5e the tanh approx
        # (EUP) is cheaper if bit-level parity is not required.
        h1 = 0.5 * h1 * (1.0 + jax.lax.erf(h1 * inv_sqrt2))
        h2 = jnp.dot(h1.astype(w2.dtype), w2,
                     preferred_element_type=jnp.float32) + b2
        y_ref[...] = (x + h2).reshape(Bt, seq_len, dim).astype(y_ref.dtype)

    return kernel


# ---------------------------------------------------------------------------
# Wrapper: stack layers along a depth axis, pack the small vectors into one
# (L, 8, W) block, and run ONE pallas_call for the whole network.
# ---------------------------------------------------------------------------
def pack_params(layers, dim, hidden_dim, weight_dtype=jnp.float32):
    L = len(layers)
    W = max(3 * dim, hidden_dim, dim)

    def vec_row(name, width):
        a = jnp.stack([p[name].reshape(-1).astype(jnp.float32)
                       for p in layers], axis=0)            # (L, width)
        if width < W:
            a = jnp.pad(a, ((0, 0), (0, W - width)))
        return a

    rows = [("ln1_g", dim), ("ln1_b", dim), ("bqkv", 3 * dim), ("bo", dim),
            ("ln2_g", dim), ("ln2_b", dim), ("b1", hidden_dim), ("b2", dim)]
    vecs = jnp.stack([vec_row(n, w) for n, w in rows], axis=1)  # (L, 8, W)

    wqkv = jnp.stack([p["wqkv"] for p in layers]).astype(weight_dtype)
    wo = jnp.stack([p["wo"] for p in layers]).astype(weight_dtype)
    w1 = jnp.stack([p["w1"] for p in layers]).astype(weight_dtype)
    w2 = jnp.stack([p["w2"] for p in layers]).astype(weight_dtype)
    return wqkv, wo, w1, w2, vecs


def _pick_batch_tile(B):
    # Largest divisor of B that still leaves >= 2 grid points on the parallel
    # batch axis (megacore / both v7x TensorCores get work).  In production,
    # size Bt from the per-generation VMEM budget instead.
    if B <= 1:
        return 1
    cap = max(1, B // 2)
    for d in range(min(cap, 8), 0, -1):
        if B % d == 0:
            return d
    return 1


def _default_vmem_limit():
    # ~75% of physical VMEM, capped at 96 MiB: ~96 MiB on v5e/v6e (128 MiB),
    # ~48 MiB on v7x (64 MiB).  Falls back to 64 MiB if the query fails.
    try:
        cap = pltpu.get_tpu_info().vmem_capacity_bytes
    except Exception:
        return 64 * 1024 * 1024
    return min(int(cap) * 3 // 4, 96 * 1024 * 1024)


def transformer_forward_pallas(x, layers, heads, *, batch_tile=None,
                               weight_dtype=jnp.float32):
    B, N, D = x.shape
    depth = len(layers)
    hidden_dim = layers[0]["w1"].shape[1]
    if batch_tile is None:
        batch_tile = _pick_batch_tile(B)
    assert B % batch_tile == 0, "batch_tile must divide the batch size"
    assert D % heads == 0

    wqkv, wo, w1, w2, vecs = pack_params(layers, D, hidden_dim, weight_dtype)
    W = vecs.shape[-1]
    kernel = make_transformer_kernel(D, heads, hidden_dim, N, batch_tile)

    in_specs = [
        pl.BlockSpec((batch_tile, N, D), lambda b, l: (b, 0, 0)),   # x
        pl.BlockSpec((1, D, 3 * D), lambda b, l: (l, 0, 0)),        # Wqkv
        pl.BlockSpec((1, D, D), lambda b, l: (l, 0, 0)),            # Wo
        pl.BlockSpec((1, D, hidden_dim), lambda b, l: (l, 0, 0)),   # W1
        pl.BlockSpec((1, hidden_dim, D), lambda b, l: (l, 0, 0)),   # W2
        pl.BlockSpec((1, 8, W), lambda b, l: (l, 0, 0)),            # packed vecs
    ]
    out_specs = pl.BlockSpec((batch_tile, N, D), lambda b, l: (b, 0, 0))

    return pl.pallas_call(
        kernel,
        out_shape=jax.ShapeDtypeStruct((B, N, D), x.dtype),
        grid=(B // batch_tile, depth),
        in_specs=in_specs,
        out_specs=out_specs,
        compiler_params=pltpu.CompilerParams(
            dimension_semantics=("parallel", "arbitrary"),
            vmem_limit_bytes=_default_vmem_limit(),
        ),
    )(x, wqkv, wo, w1, w2, vecs)


# ---------------------------------------------------------------------------
# Deterministic parameter init (mirrors the PyTorch __init__; weights stored
# pre-transposed as (in_features, out_features))
# ---------------------------------------------------------------------------
def xavier_uniform(key, fan_in, fan_out, shape):
    bound = (6.0 / (fan_in + fan_out)) ** 0.5
    return jax.random.uniform(key, shape, jnp.float32, -bound, bound)


def init_layer(key, dim, heads, mlp_dim):
    ks = jax.random.split(key, 6)
    return dict(
        ln1_g=jnp.ones((1, dim), jnp.float32),
        ln1_b=jnp.zeros((1, dim), jnp.float32),
        wqkv=xavier_uniform(ks[0], dim, 3 * dim, (dim, 3 * dim)),
        bqkv=jnp.zeros((1, 3 * dim), jnp.float32),
        wo=xavier_uniform(ks[1], dim, dim, (dim, dim)),
        bo=jnp.zeros((1, dim), jnp.float32),
        ln2_g=jnp.ones((1, dim), jnp.float32),
        ln2_b=jnp.zeros((1, dim), jnp.float32),
        w1=xavier_uniform(ks[2], dim, mlp_dim, (dim, mlp_dim)),
        b1=(1e-6 * jax.random.normal(ks[4], (mlp_dim,), jnp.float32)
            ).reshape(1, mlp_dim),
        w2=xavier_uniform(ks[3], mlp_dim, dim, (mlp_dim, dim)),
        b2=(1e-6 * jax.random.normal(ks[5], (dim,), jnp.float32)
            ).reshape(1, dim),
    )


# ---------------------------------------------------------------------------
# Pure-JAX reference (same math as the PyTorch module, eval mode)
# ---------------------------------------------------------------------------
def ref_block(x, p, heads):
    B, N, dim = x.shape
    hd = dim // heads
    scale = dim ** (-0.5)

    def ln(z, g, b):
        mu = z.mean(-1, keepdims=True)
        var = ((z - mu) ** 2).mean(-1, keepdims=True)
        return (z - mu) / jnp.sqrt(var + 1e-5) * g + b

    xn = ln(x, p["ln1_g"][0], p["ln1_b"][0])
    qkv = xn @ p["wqkv"] + p["bqkv"][0]
    q, k, v = jnp.split(qkv, 3, axis=-1)
    q = q.reshape(B, N, heads, hd).transpose(0, 2, 1, 3)
    k = k.reshape(B, N, heads, hd).transpose(0, 2, 1, 3)
    v = v.reshape(B, N, heads, hd).transpose(0, 2, 1, 3)
    dots = jnp.einsum('bhid,bhjd->bhij', q, k) * scale
    attn = jax.nn.softmax(dots, axis=-1)
    out = jnp.einsum('bhij,bhjd->bhid', attn, v)
    out = out.transpose(0, 2, 1, 3).reshape(B, N, dim)
    out = out @ p["wo"] + p["bo"][0]
    x = x + out
    xn2 = ln(x, p["ln2_g"][0], p["ln2_b"][0])
    h1 = xn2 @ p["w1"] + p["b1"][0]
    h1 = 0.5 * h1 * (1.0 + jax.lax.erf(h1 / jnp.sqrt(2.0)))
    return x + (h1 @ p["w2"] + p["b2"][0])


if __name__ == "__main__":
    dim, depth, heads, mlp_dim = 32, 2, 8, 64
    B, N = 4, 8

    key = jax.random.PRNGKey(0)
    keys = jax.random.split(key, depth + 1)
    x = jax.random.normal(keys[0], (B, N, dim), jnp.float32)
    layers = [init_layer(k, dim, heads, mlp_dim) for k in keys[1:]]

    # f32 weights here for exact parity; pass weight_dtype=jnp.bfloat16 for
    # production on v6e/v7x (MXU operands bf16, f32 accumulate, f32 LN/softmax).
    out = transformer_forward_pallas(x, layers, heads)
    out = jax.block_until_ready(out)

    ref = x
    for p in layers:
        ref = ref_block(ref, p, heads)

    err = float(jnp.max(jnp.abs(out - ref)))
    assert jnp.allclose(out, ref, atol=2e-4, rtol=2e-4), f"max abs err {err}"
    print("KERNEL_OK")
</pallas_src>

<mosaic_0001>
module attributes {stable_mosaic.version = 11 : i64} {
  func.func @kernel(%arg0: i32, %arg1: i32, %arg2: memref<2x8x32xf32, #tpu.memory_space<vmem>>, %arg3: memref<1x32x96xf32, #tpu.memory_space<vmem>>, %arg4: memref<1x32x32xf32, #tpu.memory_space<vmem>>, %arg5: memref<1x32x64xf32, #tpu.memory_space<vmem>>, %arg6: memref<1x64x32xf32, #tpu.memory_space<vmem>>, %arg7: memref<1x8x96xf32, #tpu.memory_space<vmem>>, %arg8: memref<2x8x32xf32, #tpu.memory_space<vmem>>) attributes {dimension_semantics = [#tpu.dimension_semantics<parallel>, #tpu.dimension_semantics<arbitrary>], iteration_bounds = array<i64: 2, 2>, scalar_prefetch = 0 : i64, scratch_operands = 0 : i64, tpu.core_type = #tpu.core_type<tc>, window_params = [{transform_indices = @transform_0, window_bounds = array<i64: 2, 8, 32>}, {transform_indices = @transform_1, window_bounds = array<i64: 1, 32, 96>}, {transform_indices = @transform_2, window_bounds = array<i64: 1, 32, 32>}, {transform_indices = @transform_3, window_bounds = array<i64: 1, 32, 64>}, {transform_indices = @transform_4, window_bounds = array<i64: 1, 64, 32>}, {transform_indices = @transform_5, window_bounds = array<i64: 1, 8, 96>}, {transform_indices = @transform_6, window_bounds = array<i64: 2, 8, 32>}]} {
    %c0_i32 = arith.constant 0 : i32
    %0 = arith.cmpi eq, %arg1, %c0_i32 : i32
    %1 = arith.extui %0 : i1 to i32
    %c0_i32_0 = arith.constant 0 : i32
    %2 = arith.cmpi ne, %1, %c0_i32_0 : i32
    scf.if %2 {
      %c0_43 = arith.constant 0 : index
      %c0_44 = arith.constant 0 : index
      %c0_45 = arith.constant 0 : index
      %204 = vector.load %arg2[%c0_43, %c0_44, %c0_45] : memref<2x8x32xf32, #tpu.memory_space<vmem>>, vector<2x8x32xf32>
      %c0_46 = arith.constant 0 : index
      %c0_47 = arith.constant 0 : index
      %c0_48 = arith.constant 0 : index
      %205 = vector.load %arg8[%c0_46, %c0_47, %c0_48] : memref<2x8x32xf32, #tpu.memory_space<vmem>>, vector<2x8x32xf32>
      tpu.vector_store %arg8[%c0_46, %c0_47, %c0_48], %204 {strides = array<i32>} : memref<2x8x32xf32, #tpu.memory_space<vmem>>, vector<2x8x32xf32>,
    } else {
    }
    %c0 = arith.constant 0 : index
    %c0_1 = arith.constant 0 : index
    %c0_2 = arith.constant 0 : index
    %3 = vector.load %arg7[%c0, %c0_1, %c0_2] : memref<1x8x96xf32, #tpu.memory_space<vmem>>, vector<1x8x96xf32>
    %4 = vector.shape_cast %3 : vector<1x8x96xf32> to vector<8x96xf32>
    %5 = vector.extract_strided_slice %4 {offsets = [0, 0], sizes = [1, 32], strides = [1, 1]} : vector<8x96xf32> to vector<1x32xf32>
    %6 = vector.extract_strided_slice %4 {offsets = [1, 0], sizes = [1, 32], strides = [1, 1]} : vector<8x96xf32> to vector<1x32xf32>
    %7 = vector.extract_strided_slice %4 {offsets = [2, 0], sizes = [1, 96], strides = [1, 1]} : vector<8x96xf32> to vector<1x96xf32>
    %8 = vector.extract_strided_slice %4 {offsets = [3, 0], sizes = [1, 32], strides = [1, 1]} : vector<8x96xf32> to vector<1x32xf32>
    %9 = vector.extract_strided_slice %4 {offsets = [4, 0], sizes = [1, 32], strides = [1, 1]} : vector<8x96xf32> to vector<1x32xf32>
    %10 = vector.extract_strided_slice %4 {offsets = [5, 0], sizes = [1, 32], strides = [1, 1]} : vector<8x96xf32> to vector<1x32xf32>
    %11 = vector.extract_strided_slice %4 {offsets = [6, 0], sizes = [1, 64], strides = [1, 1]} : vector<8x96xf32> to vector<1x64xf32>
    %12 = vector.extract_strided_slice %4 {offsets = [7, 0], sizes = [1, 32], strides = [1, 1]} : vector<8x96xf32> to vector<1x32xf32>
    %c0_3 = arith.constant 0 : index
    %c0_4 = arith.constant 0 : index
    %c0_5 = arith.constant 0 : index
    %13 = vector.load %arg8[%c0_3, %c0_4, %c0_5] : memref<2x8x32xf32, #tpu.memory_space<vmem>>, vector<2x8x32xf32>
    %14 = vector.shape_cast %13 : vector<2x8x32xf32> to vector<16x32xf32>
    %cst = arith.constant dense<0.000000e+00> : vector<16xf32>
    %15 = vector.multi_reduction <add>, %14, %cst [1] : vector<16x32xf32> to vector<16xf32>
    %16 = vector.shape_cast %15 : vector<16xf32> to vector<16x1xf32>
    %cst_6 = arith.constant 3.200000e+01 : f32
    %17 = vector.broadcast %cst_6 : f32 to vector<16x1xf32>
    %18 = arith.divf %16, %17 : vector<16x1xf32>
    %19 = vector.broadcast %18 : vector<16x1xf32> to vector<16x32xf32>
    %20 = arith.subf %14, %19 : vector<16x32xf32>
    %21 = arith.mulf %20, %20 : vector<16x32xf32>
    %cst_7 = arith.constant dense<0.000000e+00> : vector<16xf32>
    %22 = vector.multi_reduction <add>, %21, %cst_7 [1] : vector<16x32xf32> to vector<16xf32>
    %23 = vector.shape_cast %22 : vector<16xf32> to vector<16x1xf32>
    %cst_8 = arith.constant 3.200000e+01 : f32
    %24 = vector.broadcast %cst_8 : f32 to vector<16x1xf32>
    %25 = arith.divf %23, %24 : vector<16x1xf32>
    %26 = vector.broadcast %18 : vector<16x1xf32> to vector<16x32xf32>
    %27 = arith.subf %14, %26 : vector<16x32xf32>
    %cst_9 = arith.constant 9.99999974E-6 : f32
    %28 = vector.broadcast %cst_9 : f32 to vector<16x1xf32>
    %29 = arith.addf %25, %28 : vector<16x1xf32>
    %30 = math.rsqrt %29 : vector<16x1xf32>
    %31 = vector.broadcast %30 : vector<16x1xf32> to vector<16x32xf32>
    %32 = arith.mulf %27, %31 : vector<16x32xf32>
    %33 = vector.broadcast %5 : vector<1x32xf32> to vector<16x32xf32>
    %34 = arith.mulf %32, %33 : vector<16x32xf32>
    %35 = vector.broadcast %6 : vector<1x32xf32> to vector<16x32xf32>
    %36 = arith.addf %34, %35 : vector<16x32xf32>
    %c0_10 = arith.constant 0 : index
    %c0_11 = arith.constant 0 : index
    %c0_12 = arith.constant 0 : index
    %37 = vector.load %arg3[%c0_10, %c0_11, %c0_12] : memref<1x32x96xf32, #tpu.memory_space<vmem>>, vector<1x32x96xf32>
    %38 = vector.shape_cast %37 : vector<1x32x96xf32> to vector<32x96xf32>
    %cst_13 = arith.constant dense<0.000000e+00> : vector<16x96xf32>
    %39 = tpu.matmul %36, %38, %cst_13 {dimension_numbers = #tpu.dot_dimension_numbers<[1], [0], [0], [1], [0, 0, 1, 1], [], []>} : vector<16x32xf32>, vector<32x96xf32>, vector<16x96xf32> -> vector<16x96xf32>
    %40 = vector.broadcast %7 : vector<1x96xf32> to vector<16x96xf32>
    %41 = arith.addf %39, %40 : vector<16x96xf32>
    %42 = vector.extract_strided_slice %41 {offsets = [0, 0], sizes = [16, 4], strides = [1, 1]} : vector<16x96xf32> to vector<16x4xf32>
    %43 = vector.shape_cast %42 : vector<16x4xf32> to vector<2x8x4xf32>
    %44 = vector.extract_strided_slice %41 {offsets = [0, 4], sizes = [16, 4], strides = [1, 1]} : vector<16x96xf32> to vector<16x4xf32>
    %45 = vector.shape_cast %44 : vector<16x4xf32> to vector<2x8x4xf32>
    %46 = vector.extract_strided_slice %41 {offsets = [0, 8], sizes = [16, 4], strides = [1, 1]} : vector<16x96xf32> to vector<16x4xf32>
    %47 = vector.shape_cast %46 : vector<16x4xf32> to vector<2x8x4xf32>
    %48 = vector.extract_strided_slice %41 {offsets = [0, 12], sizes = [16, 4], strides = [1, 1]} : vector<16x96xf32> to vector<16x4xf32>
    %49 = vector.shape_cast %48 : vector<16x4xf32> to vector<2x8x4xf32>
    %50 = vector.extract_strided_slice %41 {offsets = [0, 16], sizes = [16, 4], strides = [1, 1]} : vector<16x96xf32> to vector<16x4xf32>
    %51 = vector.shape_cast %50 : vector<16x4xf32> to vector<2x8x4xf32>
    %52 = vector.extract_strided_slice %41 {offsets = [0, 20], sizes = [16, 4], strides = [1, 1]} : vector<16x96xf32> to vector<16x4xf32>
    %53 = vector.shape_cast %52 : vector<16x4xf32> to vector<2x8x4xf32>
    %54 = vector.extract_strided_slice %41 {offsets = [0, 24], sizes = [16, 4], strides = [1, 1]} : vector<16x96xf32> to vector<16x4xf32>
    %55 = vector.shape_cast %54 : vector<16x4xf32> to vector<2x8x4xf32>
    %56 = vector.extract_strided_slice %41 {offsets = [0, 28], sizes = [16, 4], strides = [1, 1]} : vector<16x96xf32> to vector<16x4xf32>
    %57 = vector.shape_cast %56 : vector<16x4xf32> to vector<2x8x4xf32>
    %58 = vector.shape_cast %43 : vector<2x8x4xf32> to vector<1x2x8x4xf32>
    %59 = vector.shape_cast %45 : vector<2x8x4xf32> to vector<1x2x8x4xf32>
    %60 = vector.shape_cast %47 : vector<2x8x4xf32> to vector<1x2x8x4xf32>
    %61 = vector.shape_cast %49 : vector<2x8x4xf32> to vector<1x2x8x4xf32>
    %62 = vector.shape_cast %51 : vector<2x8x4xf32> to vector<1x2x8x4xf32>
    %63 = vector.shape_cast %53 : vector<2x8x4xf32> to vector<1x2x8x4xf32>
    %64 = vector.shape_cast %55 : vector<2x8x4xf32> to vector<1x2x8x4xf32>
    %65 = vector.shape_cast %57 : vector<2x8x4xf32> to vector<1x2x8x4xf32>
    %66 = tpu.concatenate %58, %59, %60, %61, %62, %63, %64, %65 in 0 : vector<1x2x8x4xf32>, vector<1x2x8x4xf32>, vector<1x2x8x4xf32>, vector<1x2x8x4xf32>, vector<1x2x8x4xf32>, vector<1x2x8x4xf32>, vector<1x2x8x4xf32>, vector<1x2x8x4xf32> -> vector<8x2x8x4xf32>
    %67 = vector.shape_cast %66 : vector<8x2x8x4xf32> to vector<16x8x4xf32>
    %68 = vector.extract_strided_slice %41 {offsets = [0, 32], sizes = [16, 4], strides = [1, 1]} : vector<16x96xf32> to vector<16x4xf32>
    %69 = vector.shape_cast %68 : vector<16x4xf32> to vector<2x8x4xf32>
    %70 = vector.extract_strided_slice %41 {offsets = [0, 36], sizes = [16, 4], strides = [1, 1]} : vector<16x96xf32> to vector<16x4xf32>
    %71 = vector.shape_cast %70 : vector<16x4xf32> to vector<2x8x4xf32>
    %72 = vector.extract_strided_slice %41 {offsets = [0, 40], sizes = [16, 4], strides = [1, 1]} : vector<16x96xf32> to vector<16x4xf32>
    %73 = vector.shape_cast %72 : vector<16x4xf32> to vector<2x8x4xf32>
    %74 = vector.extract_strided_slice %41 {offsets = [0, 44], sizes = [16, 4], strides = [1, 1]} : vector<16x96xf32> to vector<16x4xf32>
    %75 = vector.shape_cast %74 : vector<16x4xf32> to vector<2x8x4xf32>
    %76 = vector.extract_strided_slice %41 {offsets = [0, 48], sizes = [16, 4], strides = [1, 1]} : vector<16x96xf32> to vector<16x4xf32>
    %77 = vector.shape_cast %76 : vector<16x4xf32> to vector<2x8x4xf32>
    %78 = vector.extract_strided_slice %41 {offsets = [0, 52], sizes = [16, 4], strides = [1, 1]} : vector<16x96xf32> to vector<16x4xf32>
    %79 = vector.shape_cast %78 : vector<16x4xf32> to vector<2x8x4xf32>
    %80 = vector.extract_strided_slice %41 {offsets = [0, 56], sizes = [16, 4], strides = [1, 1]} : vector<16x96xf32> to vector<16x4xf32>
    %81 = vector.shape_cast %80 : vector<16x4xf32> to vector<2x8x4xf32>
    %82 = vector.extract_strided_slice %41 {offsets = [0, 60], sizes = [16, 4], strides = [1, 1]} : vector<16x96xf32> to vector<16x4xf32>
    %83 = vector.shape_cast %82 : vector<16x4xf32> to vector<2x8x4xf32>
    %84 = vector.shape_cast %69 : vector<2x8x4xf32> to vector<1x2x8x4xf32>
    %85 = vector.shape_cast %71 : vector<2x8x4xf32> to vector<1x2x8x4xf32>
    %86 = vector.shape_cast %73 : vector<2x8x4xf32> to vector<1x2x8x4xf32>
    %87 = vector.shape_cast %75 : vector<2x8x4xf32> to vector<1x2x8x4xf32>
    %88 = vector.shape_cast %77 : vector<2x8x4xf32> to vector<1x2x8x4xf32>
    %89 = vector.shape_cast %79 : vector<2x8x4xf32> to vector<1x2x8x4xf32>
    %90 = vector.shape_cast %81 : vector<2x8x4xf32> to vector<1x2x8x4xf32>
    %91 = vector.shape_cast %83 : vector<2x8x4xf32> to vector<1x2x8x4xf32>
    %92 = tpu.concatenate %84, %85, %86, %87, %88, %89, %90, %91 in 0 : vector<1x2x8x4xf32>, vector<1x2x8x4xf32>, vector<1x2x8x4xf32>, vector<1x2x8x4xf32>, vector<1x2x8x4xf32>, vector<1x2x8x4xf32>, vector<1x2x8x4xf32>, vector<1x2x8x4xf32> -> vector<8x2x8x4xf32>
    %93 = vector.shape_cast %92 : vector<8x2x8x4xf32> to vector<16x8x4xf32>
    %94 = vector.extract_strided_slice %41 {offsets = [0, 64], sizes = [16, 4], strides = [1, 1]} : vector<16x96xf32> to vector<16x4xf32>
    %95 = vector.shape_cast %94 : vector<16x4xf32> to vector<2x8x4xf32>
    %96 = vector.extract_strided_slice %41 {offsets = [0, 68], sizes = [16, 4], strides = [1, 1]} : vector<16x96xf32> to vector<16x4xf32>
    %97 = vector.shape_cast %96 : vector<16x4xf32> to vector<2x8x4xf32>
    %98 = vector.extract_strided_slice %41 {offsets = [0, 72], sizes = [16, 4], strides = [1, 1]} : vector<16x96xf32> to vector<16x4xf32>
    %99 = vector.shape_cast %98 : vector<16x4xf32> to vector<2x8x4xf32>
    %100 = vector.extract_strided_slice %41 {offsets = [0, 76], sizes = [16, 4], strides = [1, 1]} : vector<16x96xf32> to vector<16x4xf32>
    %101 = vector.shape_cast %100 : vector<16x4xf32> to vector<2x8x4xf32>
    %102 = vector.extract_strided_slice %41 {offsets = [0, 80], sizes = [16, 4], strides = [1, 1]} : vector<16x96xf32> to vector<16x4xf32>
    %103 = vector.shape_cast %102 : vector<16x4xf32> to vector<2x8x4xf32>
    %104 = vector.extract_strided_slice %41 {offsets = [0, 84], sizes = [16, 4], strides = [1, 1]} : vector<16x96xf32> to vector<16x4xf32>
    %105 = vector.shape_cast %104 : vector<16x4xf32> to vector<2x8x4xf32>
    %106 = vector.extract_strided_slice %41 {offsets = [0, 88], sizes = [16, 4], strides = [1, 1]} : vector<16x96xf32> to vector<16x4xf32>
    %107 = vector.shape_cast %106 : vector<16x4xf32> to vector<2x8x4xf32>
    %108 = vector.extract_strided_slice %41 {offsets = [0, 92], sizes = [16, 4], strides = [1, 1]} : vector<16x96xf32> to vector<16x4xf32>
    %109 = vector.shape_cast %108 : vector<16x4xf32> to vector<2x8x4xf32>
    %110 = vector.shape_cast %95 : vector<2x8x4xf32> to vector<1x2x8x4xf32>
    %111 = vector.shape_cast %97 : vector<2x8x4xf32> to vector<1x2x8x4xf32>
    %112 = vector.shape_cast %99 : vector<2x8x4xf32> to vector<1x2x8x4xf32>
    %113 = vector.shape_cast %101 : vector<2x8x4xf32> to vector<1x2x8x4xf32>
    %114 = vector.shape_cast %103 : vector<2x8x4xf32> to vector<1x2x8x4xf32>
    %115 = vector.shape_cast %105 : vector<2x8x4xf32> to vector<1x2x8x4xf32>
    %116 = vector.shape_cast %107 : vector<2x8x4xf32> to vector<1x2x8x4xf32>
    %117 = vector.shape_cast %109 : vector<2x8x4xf32> to vector<1x2x8x4xf32>
    %118 = tpu.concatenate %110, %111, %112, %113, %114, %115, %116, %117 in 0 : vector<1x2x8x4xf32>, vector<1x2x8x4xf32>, vector<1x2x8x4xf32>, vector<1x2x8x4xf32>, vector<1x2x8x4xf32>, vector<1x2x8x4xf32>, vector<1x2x8x4xf32>, vector<1x2x8x4xf32> -> vector<8x2x8x4xf32>
    %119 = vector.shape_cast %118 : vector<8x2x8x4xf32> to vector<16x8x4xf32>
    "tpu.trace_start"() <{level = 10 : i32, message = "bqd,bkd->bqk"}> : () -> ()
    %cst_14 = arith.constant dense<0.000000e+00> : vector<16x8x8xf32>
    %120 = tpu.matmul %67, %93, %cst_14 {dimension_numbers = #tpu.dot_dimension_numbers<[2], [2], [1], [1], [0, 0, 0, 1, 1, 1], [0], [0]>} : vector<16x8x4xf32>, vector<16x8x4xf32>, vector<16x8x8xf32> -> vector<16x8x8xf32>
    "tpu.trace_stop"() : () -> ()
    %cst_15 = arith.constant 0.176776692 : f32
    %121 = vector.broadcast %cst_15 : f32 to vector<16x8x8xf32>
    %122 = arith.mulf %120, %121 : vector<16x8x8xf32>
    %cst_16 = arith.constant dense<0xFF800000> : vector<16x8xf32>
    %123 = vector.multi_reduction <maximumf>, %122, %cst_16 [2] : vector<16x8x8xf32> to vector<16x8xf32>
    %124 = vector.shape_cast %123 : vector<16x8xf32> to vector<16x8x1xf32>
    %125 = vector.broadcast %124 : vector<16x8x1xf32> to vector<16x8x8xf32>
    %126 = arith.subf %122, %125 : vector<16x8x8xf32>
    %127 = math.exp %126 : vector<16x8x8xf32>
    %cst_17 = arith.constant dense<0.000000e+00> : vector<16x8xf32>
    %128 = vector.multi_reduction <add>, %127, %cst_17 [2] : vector<16x8x8xf32> to vector<16x8xf32>
    %129 = vector.shape_cast %128 : vector<16x8xf32> to vector<16x8x1xf32>
    %130 = tpu.reciprocal %129 {approx = true} : vector<16x8x1xf32> -> vector<16x8x1xf32>
    %131 = arith.mulf %129, %130 : vector<16x8x1xf32>
    %cst_18 = arith.constant 2.000000e+00 : f32
    %132 = vector.broadcast %cst_18 : f32 to vector<16x8x1xf32>
    %133 = arith.subf %132, %131 : vector<16x8x1xf32>
    %134 = arith.mulf %130, %133 : vector<16x8x1xf32>
    %135 = vector.broadcast %134 : vector<16x8x1xf32> to vector<16x8x8xf32>
    %136 = arith.mulf %127, %135 : vector<16x8x8xf32>
    "tpu.trace_start"() <{level = 10 : i32, message = "bqk,bkd->bqd"}> : () -> ()
    %cst_19 = arith.constant dense<0.000000e+00> : vector<16x8x4xf32>
    %137 = tpu.matmul %136, %119, %cst_19 {dimension_numbers = #tpu.dot_dimension_numbers<[2], [1], [1], [2], [0, 0, 0, 1, 1, 2], [0], [0]>} : vector<16x8x8xf32>, vector<16x8x4xf32>, vector<16x8x4xf32> -> vector<16x8x4xf32>
    "tpu.trace_stop"() : () -> ()
    %138 = vector.extract_strided_slice %137 {offsets = [0, 0, 0], sizes = [2, 8, 4], strides = [1, 1, 1]} : vector<16x8x4xf32> to vector<2x8x4xf32>
    %139 = vector.shape_cast %138 : vector<2x8x4xf32> to vector<16x4xf32>
    %140 = vector.extract_strided_slice %137 {offsets = [2, 0, 0], sizes = [2, 8, 4], strides = [1, 1, 1]} : vector<16x8x4xf32> to vector<2x8x4xf32>
    %141 = vector.shape_cast %140 : vector<2x8x4xf32> to vector<16x4xf32>
    %142 = vector.extract_strided_slice %137 {offsets = [4, 0, 0], sizes = [2, 8, 4], strides = [1, 1, 1]} : vector<16x8x4xf32> to vector<2x8x4xf32>
    %143 = vector.shape_cast %142 : vector<2x8x4xf32> to vector<16x4xf32>
    %144 = vector.extract_strided_slice %137 {offsets = [6, 0, 0], sizes = [2, 8, 4], strides = [1, 1, 1]} : vector<16x8x4xf32> to vector<2x8x4xf32>
    %145 = vector.shape_cast %144 : vector<2x8x4xf32> to vector<16x4xf32>
    %146 = vector.extract_strided_slice %137 {offsets = [8, 0, 0], sizes = [2, 8, 4], strides = [1, 1, 1]} : vector<16x8x4xf32> to vector<2x8x4xf32>
    %147 = vector.shape_cast %146 : vector<2x8x4xf32> to vector<16x4xf32>
    %148 = vector.extract_strided_slice %137 {offsets = [10, 0, 0], sizes = [2, 8, 4], strides = [1, 1, 1]} : vector<16x8x4xf32> to vector<2x8x4xf32>
    %149 = vector.shape_cast %148 : vector<2x8x4xf32> to vector<16x4xf32>
    %150 = vector.extract_strided_slice %137 {offsets = [12, 0, 0], sizes = [2, 8, 4], strides = [1, 1, 1]} : vector<16x8x4xf32> to vector<2x8x4xf32>
    %151 = vector.shape_cast %150 : vector<2x8x4xf32> to vector<16x4xf32>
    %152 = vector.extract_strided_slice %137 {offsets = [14, 0, 0], sizes = [2, 8, 4], strides = [1, 1, 1]} : vector<16x8x4xf32> to vector<2x8x4xf32>
    %153 = vector.shape_cast %152 : vector<2x8x4xf32> to vector<16x4xf32>
    %154 = tpu.concatenate %139, %141, %143, %145, %147, %149, %151, %153 in 1 : vector<16x4xf32>, vector<16x4xf32>, vector<16x4xf32>, vector<16x4xf32>, vector<16x4xf32>, vector<16x4xf32>, vector<16x4xf32>, vector<16x4xf32> -> vector<16x32xf32>
    %c0_20 = arith.constant 0 : index
    %c0_21 = arith.constant 0 : index
    %c0_22 = arith.constant 0 : index
    %155 = vector.load %arg4[%c0_20, %c0_21, %c0_22] : memref<1x32x32xf32, #tpu.memory_space<vmem>>, vector<1x32x32xf32>
    %156 = vector.shape_cast %155 : vector<1x32x32xf32> to vector<32x32xf32>
    %cst_23 = arith.constant dense<0.000000e+00> : vector<16x32xf32>
    %157 = tpu.matmul %154, %156, %cst_23 {dimension_numbers = #tpu.dot_dimension_numbers<[1], [0], [0], [1], [0, 0, 1, 1], [], []>} : vector<16x32xf32>, vector<32x32xf32>, vector<16x32xf32> -> vector<16x32xf32>
    %158 = vector.broadcast %8 : vector<1x32xf32> to vector<16x32xf32>
    %159 = arith.addf %157, %158 : vector<16x32xf32>
    %160 = arith.addf %14, %159 : vector<16x32xf32>
    %cst_24 = arith.constant dense<0.000000e+00> : vector<16xf32>
    %161 = vector.multi_reduction <add>, %160, %cst_24 [1] : vector<16x32xf32> to vector<16xf32>
    %162 = vector.shape_cast %161 : vector<16xf32> to vector<16x1xf32>
    %cst_25 = arith.constant 3.200000e+01 : f32
    %163 = vector.broadcast %cst_25 : f32 to vector<16x1xf32>
    %164 = arith.divf %162, %163 : vector<16x1xf32>
    %165 = vector.broadcast %164 : vector<16x1xf32> to vector<16x32xf32>
    %166 = arith.subf %160, %165 : vector<16x32xf32>
    %167 = arith.mulf %166, %166 : vector<16x32xf32>
    %cst_26 = arith.constant dense<0.000000e+00> : vector<16xf32>
    %168 = vector.multi_reduction <add>, %167, %cst_26 [1] : vector<16x32xf32> to vector<16xf32>
    %169 = vector.shape_cast %168 : vector<16xf32> to vector<16x1xf32>
    %cst_27 = arith.constant 3.200000e+01 : f32
    %170 = vector.broadcast %cst_27 : f32 to vector<16x1xf32>
    %171 = arith.divf %169, %170 : vector<16x1xf32>
    %172 = vector.broadcast %164 : vector<16x1xf32> to vector<16x32xf32>
    %173 = arith.subf %160, %172 : vector<16x32xf32>
    %cst_28 = arith.constant 9.99999974E-6 : f32
    %174 = vector.broadcast %cst_28 : f32 to vector<16x1xf32>
    %175 = arith.addf %171, %174 : vector<16x1xf32>
    %176 = math.rsqrt %175 : vector<16x1xf32>
    %177 = vector.broadcast %176 : vector<16x1xf32> to vector<16x32xf32>
    %178 = arith.mulf %173, %177 : vector<16x32xf32>
    %179 = vector.broadcast %9 : vector<1x32xf32> to vector<16x32xf32>
    %180 = arith.mulf %178, %179 : vector<16x32xf32>
    %181 = vector.broadcast %10 : vector<1x32xf32> to vector<16x32xf32>
    %182 = arith.addf %180, %181 : vector<16x32xf32>
    %c0_29 = arith.constant 0 : index
    %c0_30 = arith.constant 0 : index
    %c0_31 = arith.constant 0 : index
    %183 = vector.load %arg5[%c0_29, %c0_30, %c0_31] : memref<1x32x64xf32, #tpu.memory_space<vmem>>, vector<1x32x64xf32>
    %184 = vector.shape_cast %183 : vector<1x32x64xf32> to vector<32x64xf32>
    %c0_32 = arith.constant 0 : index
    %c0_33 = arith.constant 0 : index
    %c0_34 = arith.constant 0 : index
    %185 = vector.load %arg6[%c0_32, %c0_33, %c0_34] : memref<1x64x32xf32, #tpu.memory_space<vmem>>, vector<1x64x32xf32>
    %186 = vector.shape_cast %185 : vector<1x64x32xf32> to vector<64x32xf32>
    %cst_35 = arith.constant dense<0.000000e+00> : vector<16x64xf32>
    %187 = tpu.matmul %182, %184, %cst_35 {dimension_numbers = #tpu.dot_dimension_numbers<[1], [0], [0], [1], [0, 0, 1, 1], [], []>} : vector<16x32xf32>, vector<32x64xf32>, vector<16x64xf32> -> vector<16x64xf32>
    %188 = vector.broadcast %11 : vector<1x64xf32> to vector<16x64xf32>
    %189 = arith.addf %187, %188 : vector<16x64xf32>
    %cst_36 = arith.constant 5.000000e-01 : f32
    %190 = vector.broadcast %cst_36 : f32 to vector<16x64xf32>
    %191 = arith.mulf %190, %189 : vector<16x64xf32>
    %cst_37 = arith.constant 0.707106769 : f32
    %192 = vector.broadcast %cst_37 : f32 to vector<16x64xf32>
    %193 = arith.mulf %189, %192 : vector<16x64xf32>
    %194 = math.erf %193 : vector<16x64xf32>
    %cst_38 = arith.constant 1.000000e+00 : f32
    %195 = vector.broadcast %cst_38 : f32 to vector<16x64xf32>
    %196 = arith.addf %195, %194 : vector<16x64xf32>
    %197 = arith.mulf %191, %196 : vector<16x64xf32>
    %cst_39 = arith.constant dense<0.000000e+00> : vector<16x32xf32>
    %198 = tpu.matmul %197, %186, %cst_39 {dimension_numbers = #tpu.dot_dimension_numbers<[1], [0], [0], [1], [0, 0, 1, 1], [], []>} : vector<16x64xf32>, vector<64x32xf32>, vector<16x32xf32> -> vector<16x32xf32>
    %199 = vector.broadcast %12 : vector<1x32xf32> to vector<16x32xf32>
    %200 = arith.addf %198, %199 : vector<16x32xf32>
    %201 = arith.addf %160, %200 : vector<16x32xf32>
    %202 = vector.shape_cast %201 : vector<16x32xf32> to vector<2x8x32xf32>
    %c0_40 = arith.constant 0 : index
    %c0_41 = arith.constant 0 : index
    %c0_42 = arith.constant 0 : index
    %203 = vector.load %arg8[%c0_40, %c0_41, %c0_42] : memref<2x8x32xf32, #tpu.memory_space<vmem>>, vector<2x8x32xf32>
    tpu.vector_store %arg8[%c0_40, %c0_41, %c0_42], %202 {strides = array<i32>} : memref<2x8x32xf32, #tpu.memory_space<vmem>>, vector<2x8x32xf32>,
    return
  }
  func.func @transform_0(%arg0: i32, %arg1: i32) -> (i32, i32, i32) {
    %c0_i32 = arith.constant 0 : i32
    %c0_i32_0 = arith.constant 0 : i32
    %c0_i32_1 = arith.constant 0 : i32
    return %arg0, %c0_i32, %c0_i32_0 : i32, i32, i32
  }
  func.func @transform_1(%arg0: i32, %arg1: i32) -> (i32, i32, i32) {
    %c0_i32 = arith.constant 0 : i32
    %c0_i32_0 = arith.constant 0 : i32
    %c0_i32_1 = arith.constant 0 : i32
    return %arg1, %c0_i32, %c0_i32_0 : i32, i32, i32
  }
  func.func @transform_2(%arg0: i32, %arg1: i32) -> (i32, i32, i32) {
    %c0_i32 = arith.constant 0 : i32
    %c0_i32_0 = arith.constant 0 : i32
    %c0_i32_1 = arith.constant 0 : i32
    return %arg1, %c0_i32, %c0_i32_0 : i32, i32, i32
  }
  func.func @transform_3(%arg0: i32, %arg1: i32) -> (i32, i32, i32) {
    %c0_i32 = arith.constant 0 : i32
    %c0_i32_0 = arith.constant 0 : i32
    %c0_i32_1 = arith.constant 0 : i32
    return %arg1, %c0_i32, %c0_i32_0 : i32, i32, i32
  }
  func.func @transform_4(%arg0: i32, %arg1: i32) -> (i32, i32, i32) {
    %c0_i32 = arith.constant 0 : i32
    %c0_i32_0 = arith.constant 0 : i32
    %c0_i32_1 = arith.constant 0 : i32
    return %arg1, %c0_i32, %c0_i32_0 : i32, i32, i32
  }
  func.func @transform_5(%arg0: i32, %arg1: i32) -> (i32, i32, i32) {
    %c0_i32 = arith.constant 0 : i32
    %c0_i32_0 = arith.constant 0 : i32
    %c0_i32_1 = arith.constant 0 : i32
    return %arg1, %c0_i32, %c0_i32_0 : i32, i32, i32
  }
  func.func @transform_6(%arg0: i32, %arg1: i32) -> (i32, i32, i32) {
    %c0_i32 = arith.constant 0 : i32
    %c0_i32_0 = arith.constant 0 : i32
    %c0_i32_1 = arith.constant 0 : i32
    return %arg0, %c0_i32, %c0_i32_0 : i32, i32, i32
  }
}

</mosaic_0001>

<bundles_post_ra>
// kernel: tpu_custom_call.1
= control target key start
LH: loop header
LB: loop body
LE: loop exit
PB: predicated region body
PF: predicated region fallthrough
CT: control target
= control target key end

     0   :  { %s5999_s0 = inlined_call_operand.hbm [shape: f32[4,8,32], index: 0, kind: input, shape index: {}]   ;;  %s6000_s1 = inlined_call_operand.hbm [shape: f32[2,32,96], index: 1, kind: input, shape index: {}]   ;;  %s6001_s2 = inlined_call_operand.hbm [shape: f32[2,32,32], index: 2, kind: input, shape index: {}]   ;;  %s6002_s3 = inlined_call_operand.hbm [shape: f32[2,32,64], index: 3, kind: input, shape index: {}]   ;;  %s6003_s4 = inlined_call_operand.hbm [shape: f32[2,64,32], index: 4, kind: input, shape index: {}]   ;;  %s6004_s5 = inlined_call_operand.hbm [shape: f32[2,8,96], index: 5, kind: input, shape index: {}]   ;;  %s6005_s6 = inlined_call_operand.hbm [shape: f32[4,8,32], index: 6, kind: output, shape index: {}]  }
   0x1   :  { %6032 = sst [smem:[#allocation32_spill]] %s6000_s1 }
   0x2   :  { %6033 = sst [smem:[#allocation33_spill]] %s6002_s3 }
   0x3   :  { %6034 = sst [smem:[#allocation34_spill]] %s6003_s4 }
   0x4   :  { %6035 = sst [smem:[#allocation35_spill]] %s6004_s5 }
   0x5   :  { %6036 = sst [smem:[#allocation36_spill]] %s6005_s6 }
   0x6   :  { %11 = vsyncpa [#allocation3], 0 }
   0x7   :  { %13 = vsyncpa [#allocation3 + $0x1], 0 }
   0x8   :  { %14 = vsyncpa [#allocation6], 0 }
   0x9   :  { %16 = vsyncpa [#allocation6 + $0x1], 0 }
   0xa   :  { %17 = vsyncpa [#allocation9], 0 }
   0xb   :  { %19 = vsyncpa [#allocation9 + $0x1], 0 }
   0xc   :  { %20 = vsyncpa [#allocation12], 0 }
   0xd   :  { %22 = vsyncpa [#allocation12 + $0x1], 0 }
   0xe   :  { %23 = vsyncpa [#allocation4], 0 }
   0xf   :  { %25 = vsyncpa [#allocation4 + $0x1], 0  ;;  %s4975_s21 = smov 0   ;;  %s4977_s22 = smov 0  }
  0x10   :  { %s4979_s23 = smov 0   ;;  %s4981_s24 = smov 0  }
  0x11   :  { %s4983_s25 = smov 0   ;;  %s4985_s26 = smov 0  }
  0x12   :  { %s4987_s27 = smov 0   ;;  %s4989_s28 = smov 0  }
  0x13   :  { %s4991_s29 = smov 0   ;;  %s4993_s30 = smov 0  }
  0x14   :  { %s4995_s7 = smov 0  }
  0x15 LB: > { %6037 = sst [smem:[#allocation19_spill]] %s4878_s23  ;;  %p6009_p0 = scmp.eq.s32.totalorder %s4910_s7, 0  ;;  %s4910_s7 = sphi %s4995_s7, %s31_s7   ;;  %s4906_s30 = sphi %s4993_s30, %s6092_s30   ;;  %s4902_s29 = sphi %s4991_s29, %s6098_s29   ;;  %s4898_s28 = sphi %s4989_s28, %s6090_s28   ;;  %s4894_s27 = sphi %s4987_s27, %s6097_s27   ;;  %s4890_s26 = sphi %s4985_s26, %s6089_s26   ;;  %s4886_s25 = sphi %s4983_s25, %s6096_s25   ;;  %s4882_s24 = sphi %s4981_s24, %s6095_s24   ;;  %s4878_s23 = sphi %s4979_s23, %s6087_s23   ;;  %s4874_s22 = sphi %s4977_s22, %s6094_s22   ;;  %s4870_s21 = sphi %s4975_s21, %s6093_s21  }
  0x16   : > { %6038 = sst [smem:[#allocation20_spill]] %s4890_s26  ;;  %p83_p1 = scmp.ne.s32.totalorder %s4878_s23, %s4874_s22 }
  0x17   : > { %6039 = sst [smem:[#allocation21_spill]] %s4894_s27  ;;  %p6007_p3 = scmp.lt.s32.totalorder %s4910_s7, 4 }
  0x18   : > { %6040 = sst [smem:[#allocation22_spill]] %s4898_s28  ;;  %p85_p4 = por %p83_p1, %p6009_p0 }
  0x19   : > { %6041 = sst [smem:[#allocation23_spill]] %s4906_s30  ;;  %s6008_s9 = sand.u32 1, %s4910_s7  }
  0x1a   : > { %s5041_s10 = sand.u32 1, %s4878_s23   ;;  %s5047_s12 = sshll.u32 %s4902_s29, 9 }
  0x1b   : > { %s5044_s11 = sshll.u32 %s5041_s10, 5  ;;  %s6042_s1 = sld [smem:[#allocation32_spill]] }
  0x1c   : > { %s268_s16 = scalar_lea.vmem [#allocation5], %s5044_s11  ;;  %p5058_p5 = pnand %p6007_p3, %p85_p4 }
  0x1d   : > { %s275_s17 = sshll.u32 %s268_s16, 4  ;;  %s5068_s19 = scalar_lea.sflag [#allocation6], %s6008_s9  ;;  %s5062_s17 = int_to_ptr.vmem [resolvable:$true] %s275_s17 }
  0x1e   : > { %s6043_s18 = scalar_select %p5058_p5, 1, 0 }
  0x1f   : > { %p5074_p9 = pneg %p5058_p5 }
  0x21   : > { %s5053_s15 = scalar_lea.hbm %s6042_s1, %s5047_s12  ;;  %s4601_s8 = scalar_lea.hbm %s6042_s1, 1024 }
  0x22   : > { %s4596_s20 = scalar_lea.hbm %s5053_s15, 512  ;;  %p4602_p12 = scmp.lt.u32.totalorder %s5053_s15, %s6042_s1 }
  0x23   : > { %p4597_p8 = scmp.ne.s32.totalorder %s5053_s15, %s4596_s20  ;;  %p4603_p13 = scmp.lt.u32.totalorder %s4601_s8, %s4596_s20 }
  0x24   : > { %p4605_p4 = scmp.lt.u32.totalorder %s4596_s20, %s5053_s15 }
  0x25   : > { %p4599_p10 = pnand %p5074_p9, %p4597_p8  ;;  %p4604_p1 = por %p4603_p13, %p4602_p12 }
  0x27   : > { %p4600_p11 = pneg %p4599_p10  ;;  %p4606_p3 = por %p4605_p4, %p4604_p1 }
  0x29   : > { %p4607_p2 = pnand %p4606_p3, %p4600_p11 }
  0x2b   : > { %4610 = shalt.err (!%p4607_p2)
}
  0x2c   : > { %s4611_s9 = scalar_lea.vmem %s5062_s17, 512  ;;  %s4912_s14 = smov [#allocation5]  }
  0x2d   : > { %p4612_p8 = scmp.ne.s32.totalorder %s5062_s17, %s4611_s9  ;;  %s4616_s16 = sshll.u32 %s4912_s14, 4  ;;  %s4617_s16 = int_to_ptr.vmem [resolvable:$false] %s4616_s16 }
  0x2e   : > { %s4618_s6 = scalar_lea.vmem %s4617_s16, 1024  ;;  %p4619_p6 = scmp.lt.s32.totalorder %s5062_s17, %s4617_s16 }
  0x2f   : > { %p4614_p10 = pnand %p4612_p8, %p5074_p9  ;;  %p4620_p7 = scmp.lt.s32.totalorder %s4618_s6, %s4611_s9 }
  0x31   : > { %p4615_p0 = pneg %p4614_p10  ;;  %p4621_p12 = por %p4620_p7, %p4619_p6 }
  0x33   : > { %p4622_p13 = pnand %p4621_p12, %p4615_p0 }
  0x35   : > { %4625 = shalt.err (!%p4622_p13)
}
  0x36   : > { %s6010_s28 = smov 128   ;;  %s6012_s8 = smov 8  }
  0x37   : > { %4389 = dma.hbm_to_vmem [thread:$0]  (!%p5058_p5), %s5053_s15, 512, %s5062_s17, %s5068_s19, %s6010_s28, %s6010_s28, %s6012_s8  }
  0x38   : > { %p6045_p2 = scmp.lt.s32.totalorder %s4910_s7, 5  ;;  %p6046_p0 = scmp.ge.s32.totalorder %s4910_s7, 1 }
  0x39   : > { %s6049_s3 = sld [smem:[#allocation33_spill]]  ;;  %s310_s6 = scalar_lea.vmem [#allocation8], %s5044_s11 }
  0x3a   : > { %p5105_p3 = pnand %p6046_p0, %p6045_p2  ;;  %s317_s1 = sshll.u32 %s310_s6, 4  ;;  %s5116_s1 = int_to_ptr.vmem [resolvable:$true] %s317_s1 }
  0x3b   : > { %s6050_s15 = sand.u32 1, %s4910_s7  }
  0x3c   : > { %s6047_s9 = scalar_select %p5105_p3, 1, 0 }
  0x3d   : > { %s5120_s17 = scalar_lea.sflag [#allocation9], %s6050_s15 }
  0x3e   : > { %6048 = sst [smem:[#allocation24_spill]] %s6047_s9 }
  0x3f   : > { %s5113_s16 = scalar_lea.hbm %s6049_s3, %s5047_s12  ;;  %6051 = sst [smem:[#allocation25_spill]] %s5120_s17 }
  0x40   : > { %s4626_s28 = scalar_lea.hbm %s5113_s16, 512  ;;  %s4631_s14 = scalar_lea.hbm %s6049_s3, 1024 }
  0x41   : > { %p4627_p6 = scmp.ne.s32.totalorder %s5113_s16, %s4626_s28  ;;  %p4632_p1 = scmp.lt.u32.totalorder %s5113_s16, %s6049_s3 }
  0x42   : > { %p4633_p4 = scmp.lt.u32.totalorder %s4631_s14, %s4626_s28  ;;  %p4635_p10 = scmp.lt.u32.totalorder %s4626_s28, %s5113_s16 }
  0x43   : > { %p4629_p7 = pnand %p4627_p6, %p5074_p9 }
  0x44   : > { %p4634_p8 = por %p4633_p4, %p4632_p1 }
  0x45   : > { %p4630_p11 = pneg %p4629_p7 }
  0x46   : > { %p4636_p12 = por %p4635_p10, %p4634_p8 }
  0x48   : > { %p4637_p13 = pnand %p4636_p12, %p4630_p11 }
  0x4a   : > { %4640 = shalt.err (!%p4637_p13)
}
  0x4b   : > { %s4641_s6 = scalar_lea.vmem %s5116_s1, 512  ;;  %s4915_s8 = smov [#allocation8]  }
  0x4c   : > { %p4642_p2 = scmp.ne.s32.totalorder %s5116_s1, %s4641_s6  ;;  %s4646_s15 = sshll.u32 %s4915_s8, 4  ;;  %s4647_s15 = int_to_ptr.vmem [resolvable:$false] %s4646_s15 }
  0x4d   : > { %s4648_s27 = scalar_lea.vmem %s4647_s15, 1024  ;;  %p4649_p7 = scmp.lt.s32.totalorder %s5116_s1, %s4647_s15 }
  0x4e   : > { %p4644_p0 = pnand %p4642_p2, %p5074_p9  ;;  %p4650_p3 = scmp.lt.s32.totalorder %s4648_s27, %s4641_s6 }
  0x50   : > { %p4645_p6 = pneg %p4644_p0  ;;  %p4651_p1 = por %p4650_p3, %p4649_p7 }
  0x52   : > { %p4652_p4 = pnand %p4651_p1, %p4645_p6 }
  0x54   : > { %4655 = shalt.err (!%p4652_p4)
}
  0x55   : > { %s6052_s28 = smov 8   ;;  %s6053_s9 = smov 128  }
  0x56   : > { %4395 = dma.hbm_to_vmem [thread:$0]  (!%p5058_p5), %s5113_s16, 512, %s5116_s1, %s5120_s17, %s6053_s9, %s6053_s9, %s6052_s28  }
  0x57   : > { %s5148_s20 = sadd.s32 4294967295, %s4910_s7   ;;  %s3929_s14 = sadd.s32 4294967294, %s4910_s7  }
  0x58   : > { %s40_s6 = sadd.s32 1, %s4902_s29  ;;  %s43_s8 = sadd.s32 1, %s4906_s30 }
  0x59   : > { %p41_p3 = scmp.ge.s32.totalorder %s40_s6, 2  ;;  %s50_s15 = sadd.s32 1, %s4890_s26 }
  0x5a   : > { %p57_p11 = scmp.ne.s32.totalorder %s4890_s26, %s4886_s25  ;;  %p63_p8 = scmp.ne.s32.totalorder %s4886_s25, %s4882_s24 }
  0x5b   : > { %s6100_s6 = smov (%p41_p3, %s40_s6), 0  ;;  %s6102_s8 = smov (!%p41_p3, %s43_s8), %s4906_s30 }
  0x5c   : > { %6054 = sst [smem:[#allocation26_spill]] %s6100_s6  ;;  %p6055_p10 = scmp.eq.s32.totalorder %s4910_s7, 0 }
  0x5d   : > { %p64_p13 = scmp.eq.s32.totalorder %s5148_s20, 0  ;;  %p45_p2 = scmp.ge.s32.totalorder %s6102_s8, 2 }
  0x5e   : > { %p5166_p12 = por %p6055_p10, %p57_p11  ;;  %s73_s16 = ssub.s32 %s4902_s29, %s6100_s6 }
  0x5f   : > { %p5176_p0 = por %p64_p13, %p63_p8  ;;  %p74_p6 = scmp.eq.s32.totalorder %s73_s16, 0 }
  0x60   : > { %s6104_s8 = smov (%p45_p2, %s6102_s8), 0  ;;  %s6059_s3 = sadd.s32 1, %s4878_s23 }
  0x61   : > { %s6057_s27 = scalar_select %p5176_p0, 1, 0 }
  0x62   : > { %6058 = sst [smem:[#allocation27_spill]] %s6104_s8  ;;  %s47_s17 = ssub.s32 %s4906_s30, %s6104_s8 }
  0x63   : > { %s5185_s5 = scalar_select %p74_p6, %s4878_s23, %s6059_s3  }
  0x64   : > { %p6061_p7 = scmp.ne.s32.totalorder %s4874_s22, %s4870_s21  ;;  %p48_p4 = scmp.eq.s32.totalorder %s47_s17, 0 }
  0x65   : > { %6060 = sst [smem:[#allocation28_spill]] %s5185_s5  ;;  %p217_p3 = scmp.eq.s32.totalorder %s5148_s20, 3 }
  0x66   : > { %p5192_p1 = por %p6061_p7, %p64_p13  ;;  %p223_p10 = scmp.eq.s32.totalorder %s3929_s14, 3 }
  0x67   : > { %s243_s16 = sand.u32 1, %s4890_s26   ;;  %p5204_p2 = por %p217_p3, %p57_p11 }
  0x68   : > { %s6062_s4 = scalar_select %p5192_p1, 1, 0 }
  0x69   : > { %s5199_s6 = scalar_select %p48_p4, %s4890_s26, %s50_s15  }
  0x6a   : > { %6063 = sst [smem:[#allocation29_spill]] %s6062_s4  ;;  %p5211_p6 = por %p223_p10, %p63_p8 }
  0x6b   : > { %6064 = sst [smem:[#allocation30_spill]] %s5199_s6  ;;  %s3932_s8 = sshll.u32 %s243_s16, 4 }
  0x6c   : > { %s6065_s3 = scalar_select %p5204_p2, 1, 0 }
  0x6d   : > { %s6066_s21 = scalar_select %p5211_p6, 1, 0 }
  0x6e   : > { %s4019_s5 = sshll.u32 %s4906_s30, 8  ;;  %s247_s14 = scalar_lea.vmem [#allocation2], %s3932_s8 }
  0x6f   : > { %6067 = sst [smem:[#allocation31_spill]] %s6066_s21  ;;  %s5219_s17 = scalar_lea.hbm %s5999_s0, %s4019_s5 }
  0x70   : > { %s254_s15 = sshll.u32 %s247_s14, 4  ;;  %p6068_p11 = scmp.lt.s32.totalorder %s4910_s7, 4  ;;  %s5221_s15 = int_to_ptr.vmem [resolvable:$true] %s254_s15 }
  0x71   : > { %s5235_s4 = scalar_lea.hbm %s6001_s2, %s5047_s12  ;;  %s289_s5 = scalar_lea.vmem [#allocation7], %s5044_s11 }
  0x72   : > { %p5227_p8 = pnand %p6068_p11, %p5166_p12  ;;  %s5238_s23 = sshll.u32 %s289_s5, 4  ;;  %s5272_s23 = int_to_ptr.vmem [resolvable:$true] %s5238_s23 }
  0x73   : > { %s5240_s8 = scalar_lea.sflag [#allocation3], %s243_s16  ;;  %s4656_s14 = scalar_lea.hbm %s5219_s17, 256 }
  0x74   : > { %p4657_p13 = scmp.ne.s32.totalorder %s5219_s17, %s4656_s14  ;;  %p4658_p7 = pneg %p5227_p8 }
  0x75   : > { %s4661_s26 = scalar_lea.hbm %s5999_s0, 512  ;;  %p4662_p3 = scmp.lt.u32.totalorder %s5219_s17, %s5999_s0 }
  0x76   : > { %p4659_p12 = pnand %p4658_p7, %p4657_p13  ;;  %p4663_p10 = scmp.lt.u32.totalorder %s4661_s26, %s4656_s14 }
  0x77   : > { %p4665_p6 = scmp.lt.u32.totalorder %s4656_s14, %s5219_s17 }
  0x78   : > { %p4660_p4 = pneg %p4659_p12  ;;  %p4664_p11 = por %p4663_p10, %p4662_p3 }
  0x7a   : > { %p4666_p2 = por %p4665_p6, %p4664_p11 }
  0x7c   : > { %p4667_p1 = pnand %p4666_p2, %p4660_p4 }
  0x7e   : > { %4670 = shalt.err (!%p4667_p1)
}
  0x7f   : > { %s4671_s11 = scalar_lea.vmem %s5221_s15, 256  ;;  %s4916_s16 = smov [#allocation2]  }
  0x80   : > { %p4672_p13 = scmp.ne.s32.totalorder %s5221_s15, %s4671_s11  ;;  %s4676_s21 = sshll.u32 %s4916_s16, 4  ;;  %s4677_s21 = int_to_ptr.vmem [resolvable:$false] %s4676_s21 }
  0x81   : > { %s4678_s5 = scalar_lea.vmem %s4677_s21, 512  ;;  %p4679_p5 = scmp.lt.s32.totalorder %s5221_s15, %s4677_s21 }
  0x82   : > { %p4674_p12 = pnand %p4672_p13, %p4658_p7  ;;  %p4680_p3 = scmp.lt.s32.totalorder %s4678_s5, %s4671_s11 }
  0x84   : > { %p4675_p0 = pneg %p4674_p12  ;;  %p4681_p10 = por %p4680_p3, %p4679_p5 }
  0x86   : > { %p4682_p6 = pnand %p4681_p10, %p4675_p0 }
  0x88   : > { %4685 = shalt.err (!%p4682_p6)
}
  0x89   : > { %4386 = dma.hbm_to_vmem [thread:$0]  (!%p5227_p8), %s5219_s17, 256, %s5221_s15, %s5240_s8, %s6053_s9, %s6053_s9, %s6052_s28  }
  0x8a   : > { %s3944_s14 = sshll.u32 %s5041_s10, 6  ;;  %s4686_s1 = scalar_lea.hbm %s5235_s4, 512 }
  0x8b   : > { %p4687_p5 = scmp.ne.s32.totalorder %s5235_s4, %s4686_s1  ;;  %s4691_s30 = scalar_lea.hbm %s6001_s2, 1024 }
  0x8c   : > { %p4692_p2 = scmp.lt.u32.totalorder %s5235_s4, %s6001_s2  ;;  %p4693_p7 = scmp.lt.u32.totalorder %s4691_s30, %s4686_s1 }
  0x8d   : > { %p4689_p0 = pnand %p4687_p5, %p5074_p9  ;;  %p4695_p11 = scmp.lt.u32.totalorder %s4686_s1, %s5235_s4 }
  0x8e   : > { %p4694_p4 = por %p4693_p7, %p4692_p2 }
  0x8f   : > { %p4690_p1 = pneg %p4689_p0 }
  0x90   : > { %p4696_p8 = por %p4695_p11, %p4694_p4 }
  0x92   : > { %p4697_p13 = pnand %p4696_p8, %p4690_p1 }
  0x94   : > { %4700 = shalt.err (!%p4697_p13)
}
  0x95   : > { %s4701_s17 = scalar_lea.vmem %s5272_s23, 512  ;;  %s4917_s15 = smov [#allocation7]  }
  0x96   : > { %p4702_p12 = scmp.ne.s32.totalorder %s5272_s23, %s4701_s17  ;;  %s4706_s8 = sshll.u32 %s4917_s15, 4  ;;  %s4707_s8 = int_to_ptr.vmem [resolvable:$false] %s4706_s8 }
  0x97   : > { %s4708_s16 = scalar_lea.vmem %s4707_s8, 1024  ;;  %p4709_p6 = scmp.lt.s32.totalorder %s5272_s23, %s4707_s8 }
  0x98   : > { %p4704_p3 = pnand %p4702_p12, %p5074_p9  ;;  %p4710_p5 = scmp.lt.s32.totalorder %s4708_s16, %s4701_s17 }
  0x9a   : > { %p4705_p10 = pneg %p4704_p3  ;;  %p4711_p0 = por %p4710_p5, %p4709_p6 }
  0x9c   : > { %p4712_p2 = pnand %p4711_p0, %p4705_p10 }
  0x9e   : > { %4715 = shalt.err (!%p4712_p2)
}
  0x9f   : > { %p6070_p1 = scmp.ne.s32.totalorder %s6043_s18, 0  ;;  %s4023_s21 = sshll.u32 %s4902_s29, 10 }
  0xa0   : > { %s6071_s6 = sld [smem:[#allocation34_spill]]  ;;  %s331_s30 = scalar_lea.vmem [#allocation10], %s3944_s14 }
  0xa1   : > { %4392 = dma.hbm_to_vmem [thread:$0]  (!%p6070_p1), %s5235_s4, 512, %s5272_s23, %s5068_s19, %s6053_s9, %s6053_s9, %s6052_s28  }
  0xa2   : > { %s338_s12 = sshll.u32 %s331_s30, 4  ;;  %s5308_s12 = int_to_ptr.vmem [resolvable:$true] %s338_s12 }
  0xa6   : > { %s5304_s26 = scalar_lea.hbm %s6071_s6, %s4023_s21  ;;  %s4721_s23 = scalar_lea.hbm %s6071_s6, 2048 }
  0xa7   : > { %s4716_s11 = scalar_lea.hbm %s5304_s26, 1024  ;;  %p4722_p8 = scmp.lt.u32.totalorder %s5304_s26, %s6071_s6 }
  0xa8   : > { %p4717_p7 = scmp.ne.s32.totalorder %s5304_s26, %s4716_s11  ;;  %p4723_p13 = scmp.lt.u32.totalorder %s4721_s23, %s4716_s11 }
  0xa9   : > { %p4725_p3 = scmp.lt.u32.totalorder %s4716_s11, %s5304_s26 }
  0xaa   : > { %p4719_p4 = pnand %p4717_p7, %p5074_p9  ;;  %p4724_p12 = por %p4723_p13, %p4722_p8 }
  0xac   : > { %p4720_p11 = pneg %p4719_p4  ;;  %p4726_p10 = por %p4725_p3, %p4724_p12 }
  0xae   : > { %p4727_p6 = pnand %p4726_p10, %p4720_p11 }
  0xb0   : > { %4730 = shalt.err (!%p4727_p6)
}
  0xb1   : > { %s4731_s14 = scalar_lea.vmem %s5308_s12, 1024  ;;  %s4918_s8 = smov [#allocation10]  }
  0xb2   : > { %p4732_p5 = scmp.ne.s32.totalorder %s5308_s12, %s4731_s14  ;;  %s4736_s16 = sshll.u32 %s4918_s8, 4  ;;  %s4737_s16 = int_to_ptr.vmem [resolvable:$false] %s4736_s16 }
  0xb3   : > { %s4738_s21 = scalar_lea.vmem %s4737_s16, 2048  ;;  %p4739_p7 = scmp.lt.s32.totalorder %s5308_s12, %s4737_s16 }
  0xb4   : > { %p4734_p0 = pnand %p4732_p5, %p5074_p9  ;;  %p4740_p4 = scmp.lt.s32.totalorder %s4738_s21, %s4731_s14 }
  0xb6   : > { %p4735_p2 = pneg %p4734_p0  ;;  %p4741_p8 = por %p4740_p4, %p4739_p7 }
  0xb8   : > { %p4742_p13 = pnand %p4741_p8, %p4735_p2 }
  0xba   : > { %4745 = shalt.err (!%p4742_p13)
}
  0xbb   : > { %s6072_s5 = sld [smem:[#allocation25_spill]]  ;;  %s3947_s1 = sshll.u32 %s5041_s10, 3 }
  0xbc   : > { %s3948_s30 = sshll.u32 %s4902_s29, 7  ;;  %s6073_s4 = sld [smem:[#allocation35_spill]] }
  0xbd   : > { %s352_s17 = scalar_lea.vmem [#allocation11], %s3947_s1  ;;  %s349_s14 = scalar_lea.sflag [#allocation12], %s5041_s10 }
  0xbe   : > { %s359_s15 = sshll.u32 %s352_s17, 4  ;;  %s360_s15 = int_to_ptr.vmem [resolvable:$true] %s359_s15 }
  0xc1   : > { %4398 = dma.hbm_to_vmem [thread:$0]  (!%p6070_p1), %s5304_s26, 1024, %s5308_s12, %s6072_s5, %s6053_s9, %s6053_s9, %s6052_s28  }
  0xc2   : > { %s5340_s23 = scalar_lea.hbm %s6073_s4, %s3948_s30  ;;  %s4751_s26 = scalar_lea.hbm %s6073_s4, 256 }
  0xc3   : > { %s4746_s8 = scalar_lea.hbm %s5340_s23, 128  ;;  %p4752_p10 = scmp.lt.u32.totalorder %s5340_s23, %s6073_s4 }
  0xc4   : > { %p4747_p11 = scmp.ne.s32.totalorder %s5340_s23, %s4746_s8  ;;  %p4753_p6 = scmp.lt.u32.totalorder %s4751_s26, %s4746_s8 }
  0xc5   : > { %p4755_p0 = scmp.lt.u32.totalorder %s4746_s8, %s5340_s23 }
  0xc6   : > { %p4749_p12 = pnand %p4747_p11, %p5074_p9  ;;  %p4754_p5 = por %p4753_p6, %p4752_p10 }
  0xc8   : > { %p4750_p3 = pneg %p4749_p12  ;;  %p4756_p2 = por %p4755_p0, %p4754_p5 }
  0xca   : > { %p4757_p7 = pnand %p4756_p2, %p4750_p3 }
  0xcc   : > { %4760 = shalt.err (!%p4757_p7)
}
  0xcd   : > { %s4761_s10 = scalar_lea.vmem %s360_s15, 128  ;;  %s4919_s21 = smov [#allocation11]  }
  0xce   : > { %p4762_p4 = scmp.ne.s32.totalorder %s360_s15, %s4761_s10  ;;  %s4766_s5 = sshll.u32 %s4919_s21, 4  ;;  %s4767_s5 = int_to_ptr.vmem [resolvable:$false] %s4766_s5 }
  0xcf   : > { %s4768_s1 = scalar_lea.vmem %s4767_s5, 256  ;;  %p4769_p11 = scmp.lt.s32.totalorder %s360_s15, %s4767_s5 }
  0xd0   : > { %p4764_p8 = pnand %p4762_p4, %p5074_p9  ;;  %p4770_p12 = scmp.lt.s32.totalorder %s4768_s1, %s4761_s10 }
  0xd2   : > { %p4765_p13 = pneg %p4764_p8  ;;  %p4771_p1 = por %p4770_p12, %p4769_p11 }
  0xd4   : > { %p4772_p6 = pnand %p4771_p1, %p4765_p13 }
  0xd6   : > { %4775 = shalt.err (!%p4772_p6)
}
  0xd7   : > { %p6074_p10 = scmp.ne.s32.totalorder %s6043_s18, 0  ;;  %s6075_s30 = sld [smem:[#allocation24_spill]] }
  0xd9   : > { %4401 = dma.hbm_to_vmem [thread:$0]  (!%p6074_p10), %s5340_s23, 128, %s360_s15, %s349_s14  }
  0xdd   : > { %p6076_p3 = scmp.ne.s32.totalorder %s6075_s30, 0 }
  0xde   : > { %s5363_s13 = sand.u32 (!%p6076_p3), 1, %s4886_s25   ;;  %p6077_p9 = scmp.ne.s32.totalorder (!%p6076_p3), %s6057_s27, 0 }
  0xdf   : > { %368 = sbr.rel (%p6076_p3) target bundleno = 2918 (0xb66), region = 44  ;;  %s3950_s11 = sshll.u32 (!%p6076_p3), %s5363_s13, 4 }
  0xe0   : > { %s371_s19 = scalar_lea.sflag (!%p6076_p3), [#allocation3], %s5363_s13  ;;  %s374_s17 = scalar_lea.vmem (!%p6076_p3), [#allocation2], %s3950_s11 }
  0xe6   : > { %4849 = dma.done.wait (%p6077_p9), %s371_s19, 256  }
  0xe7   : > { %4851 = vsyncadd (%p6077_p9), %s371_s19, 4294967040  ;;  %s6078_s18 = sld [smem:[#allocation29_spill]]  ;;  %s379_s23 = sand.u32 1, %s5148_s20  }
  0xe8   : > { %s381_s15 = sand.u32 1, %s4874_s22   ;;  %s380_s8 = scalar_lea.sflag [#allocation6], %s379_s23 }
  0xe9   : > { %s3951_s14 = sshll.u32 %s381_s15, 5 }
  0xea   : > { %s5373_s28 = scalar_lea.vmem [#allocation5], %s3951_s14 }
  0xed   : > { %p6079_p1 = scmp.ne.s32.totalorder %s6078_s18, 0 }
  0xef   : > { %4853 = dma.done.wait (%p6079_p1), %s380_s8, 1024  }
  0xf0   : > { %4855 = vsyncadd (%p6079_p1), %s380_s8, 4294966272  ;;  %s5379_s9 = scalar_lea.vmem [#allocation7], %s3951_s14  ;;  %s398_s26 = scalar_lea.sflag [#allocation9], %s379_s23 }
  0xf1   : > { %s5381_s27 = scalar_lea.vmem [#allocation8], %s3951_s14 }
  0xf2   : > { %4857 = dma.done.wait (%p6079_p1), %s398_s26, 1536  }
  0xf3   : > { %4859 = vsyncadd (%p6079_p1), %s398_s26, 4294965760  ;;  %s3954_s20 = sshll.u32 %s381_s15, 6  ;;  %s3955_s12 = sshll.u32 %s381_s15, 3 }
  0xf4   : > { %s5387_s16 = scalar_lea.vmem [#allocation10], %s3954_s20  ;;  %s416_s10 = scalar_lea.sflag [#allocation12], %s381_s15 }
  0xf5   : > { %s5389_s21 = scalar_lea.vmem [#allocation11], %s3955_s12 }
  0xf6   : > { %4861 = dma.done.wait (%p6079_p1), %s416_s10, 128  }
  0xf7   : > { %4863 = vsyncadd (%p6079_p1), %s416_s10, 4294967168  ;;  %s5395_s5 = scalar_lea.vmem [#allocation13], %s3950_s11  ;;  %s6080_s1 = sld [smem:[#allocation21_spill]] }
  0xfd   : > { %p3957_p5 = scmp.ne.s32.totalorder %s6080_s1, 0 }
  0xfe   : > { %v479_v0 = vld [vmem:[%s374_s17] sm:$0xff] (!%p3957_p5)  ;;  %vm481_vm0 = vcmask (!%p3957_p5), 261120   ;;  %v480_v1 = vld [vmem:[%s374_s17 + $0x8] sm:$0xff] (!%p3957_p5) }
  0xff   : > { %478 = sbr.rel (%p3957_p5) target bundleno = 262 (0x106), region = 72  ;;  %482 = vst.msk [vmem:[%s5395_s5] sm:$0xff] (!%p3957_p5), %vm481_vm0, %v479_v0  ;;  %483 = vst.msk [vmem:[%s5395_s5 + $0x8] sm:$0xff] (!%p3957_p5), %vm481_vm0, %v480_v1 }
 0x106 PF: > { %v485_v2 = vld [vmem:[%s5395_s5] sm:$0xff]  ;;  %vm487_vm1 = vcmask 261120   ;;  %v486_v3 = vld [vmem:[%s5395_s5 + $0x8] sm:$0xff]  ;;  %v515_v24 = vlaneseq  ;;  %s4920_s30 = smov 124   ;;  %s4921_s11 = smov 120   ;;  %v4924_v49 = vmov 0.0  }
 0x107   : > { %v488_v4 = vsel %vm487_vm1, %v485_v2, 0.0  ;;  %v491_v5 = vsel %vm487_vm1, %v486_v3, 0.0  ;;  %v527_v16 = vld [vmem:[%s5373_s28] sm:$0xff]  ;;  %v528_v17 = vld [vmem:[%s5373_s28 + $0x8] sm:$0xff]  ;;  %v529_v18 = vld [vmem:[%s5373_s28 + $0x10] sm:$0xff]  ;;  %s4922_s19 = smov 116   ;;  %4138 = vmatprep.subr.mxu0 %v4924_v49 }
 0x108   : > { %489 = vadd.xlane.f32.xlu0 %v488_v4  ;;  %v4329_v19 = vpack.c.bf16 %v528_v17, %v527_v16  ;;  %v530_v20 = vld [vmem:[%s5373_s28 + $0x18] sm:$0xff]  ;;  %v5410_v28 = vshrl.u32 %v515_v24, 7  ;;  %v484_v31 = vld [vmem:[%s5389_s21] sm:$0xff]  ;;  %s4923_s17 = smov 112   ;;  %s4925_s18 = smov 108   ;;  %vm4926_vm2 = vmmov 0  }
 0x109   : > { %v4333_v21 = vpack.c.bf16 %v530_v20, %v529_v18  ;;  %4140 = vmatprep.mubr.msk.f32.mxu0 %vm4926_vm2, %v4924_v49  ;;  %s4927_s23 = smov 104   ;;  %s4928_s15 = smov 100   ;;  %vm648_vm3 = vcmask 31744   ;;  %vm1879_vm4 = vcmask 64512   ;;  %vm3380_vm5 = vcmask 97280  }
 0x10a   : > { %4330 = vmatprep.subr.bf16.mxu1 %v4329_v19  ;;  %v517_v30 = vsub.s32 0, %v5410_v28  ;;  %v523_v32 = vsub.s32 1, %v5410_v28  ;;  %v533_v43 = vsub.s32 2, %v5410_v28  ;;  %s4929_s14 = smov 96   ;;  %s4930_s8 = smov 64   ;;  %vm3383_vm6 = vcmask 130048  }
 0x10b   : > { %4332 = vmatpush3.bf16.msra.mxu1 %v4329_v19  ;;  %s4931_s28 = smov 4   ;;  %s4932_s26 = smov 8   ;;  %vm3386_vm7 = vcmask 162816   ;;  %vm3389_vm8 = vcmask 195584   ;;  %vm3392_vm9 = vcmask 228352   ;;  %vm3635_vm10 = vcmask 523264  }
 0x10c   : > { %492 = vadd.xlane.f32.xlu0 %v491_v5  ;;  %4334 = vmatprep.subr.bf16.mxu1 %v4333_v21  ;;  %v518_v33 = vrot.slane %v484_v31, %v517_v30  ;;  %v524_v36 = vrot.slane %v484_v31, %v523_v32  ;;  %v534_v44 = vrot.slane %v484_v31, %v533_v43  ;;  %s4933_s20 = smov 12   ;;  %s4934_s12 = smov 16  }
 0x10d   : > { %s4935_s10 = smov 20   ;;  %s4937_s1 = smov 28  }
 0x10e   : > { %p6083_p2 = scmp.ne.s32.totalorder %s6065_s3, 0 }
 0x10f   : > { %4336 = vmatpush3.bf16.msra.mxu1 %v4333_v21 }
 0x110   : > { %4128 = vmatprep.subr.mxu1 %v4924_v49 }
 0x195   : > { %v490_v6 = vpop.xlane.xlu0 %489 }
 0x196   : > { %v495_v7 = vmul.f32 0.03125, %v490_v6 }
 0x198   : > { %v497_v8 = vsub.f32 %v485_v2, %v495_v7 }
 0x199   : > { %v493_v9 = vpop.xlane.xlu0 %492 }
 0x19a   : > { %v496_v10 = vmul.f32 0.03125, %v493_v9  ;;  %v499_v11 = vmul.f32 %v497_v8, %v497_v8 }
 0x19c   : > { %v498_v12 = vsub.f32 %v486_v3, %v496_v10  ;;  %v501_v13 = vsel %vm487_vm1, %v499_v11, 0.0 }
 0x19d   : > { %502 = vadd.xlane.f32.xlu1 %v501_v13 }
 0x19e   : > { %v500_v14 = vmul.f32 %v498_v12, %v498_v12 }
 0x1a0   : > { %v504_v15 = vsel %vm487_vm1, %v500_v14, 0.0 }
 0x1a1   : > { %505 = vadd.xlane.f32.xlu1 %v504_v15 }
 0x22a   : > { %v503_v22 = vpop.xlane.xlu1 %502 }
 0x22b   : > { %v507_v23 = vmul.f32 0.03125, %v503_v22 }
 0x22d   : > { %v509_v25 = vadd.f32 1e-05, %v507_v23 }
 0x22e   : > { %v506_v26 = vpop.xlane.xlu1 %505 }
 0x22f   : > { %4517 = vrsqrt.f32 %v509_v25  ;;  %v508_v27 = vmul.f32 0.03125, %v506_v26 }
 0x231   : > { %v510_v29 = vadd.f32 1e-05, %v508_v27 }
 0x233   : > { %4519 = vrsqrt.f32 %v510_v29 }
 0x239   : > { %v4518_v34 = vpop.eup %4517 }
 0x23a   : > { %v513_v35 = vmul.f32 %v4518_v34, %v497_v8 }
 0x23c   : > { %v519_v37 = vmul.f32 %v518_v33, %v513_v35 }
 0x23d   : > { %v4520_v38 = vpop.eup %4519 }
 0x23e   : > { %v514_v39 = vmul.f32 %v4520_v38, %v498_v12  ;;  %v525_v40 = vadd.f32 %v524_v36, %v519_v37 }
 0x240   : > { %v520_v41 = vmul.f32 %v518_v33, %v514_v39  ;;  %4125 = vmatprep.mubr.msk.f32.mxu1 %vm487_vm1, %v525_v40 }
 0x242   : > { %v526_v42 = vadd.f32 %v524_v36, %v520_v41 }
 0x244   : > { %4126 = vmatmul.mubr.msk.f32.vlgmr.msra.gmra.mrb[0].mxu1 %vm487_vm1, %v526_v42 }
 0x245   : > { %4130 = vmatprep.mubr.msk.f32.mxu1 %vm4926_vm2, %v4924_v49 }
 0x317   : > { %v4127_v45 = vpop.f32.mrb[0].mxu1 }
 0x318   : > { %v5418_v46 = vadd.f32 %v4127_v45, %v534_v44  ;;  %v607_v47 = vpop.f32.mrb[1].mxu1 }
 0x319   : > { %v5420_v48 = vadd.f32 %v607_v47, %v534_v44 }
 0x31a   : > { %620 = vrot.lane.b32.xlu1 %v5418_v46, %s4920_s30 }
 0x31b   : > { %618 = vrot.lane.b32.xlu0 %v5420_v48, %s4920_s30 }
 0x31e   : > { %622 = vrot.lane.b32.xlu1 %v5420_v48, %s4921_s11 }
 0x31f   : > { %626 = vrot.lane.b32.xlu0 %v5420_v48, %s4922_s19 }
 0x322   : > { %624 = vrot.lane.b32.xlu1 %v5418_v46, %s4921_s11 }
 0x323   : > { %630 = vrot.lane.b32.xlu0 %v5420_v48, %s4923_s17 }
 0x326   : > { %628 = vrot.lane.b32.xlu1 %v5418_v46, %s4922_s19  ;;  %s6082_s19 = sld [smem:[#allocation36_spill]] }
 0x327   : > { %634 = vrot.lane.b32.xlu0 %v5420_v48, %s4925_s18 }
 0x32a   : > { %632 = vrot.lane.b32.xlu1 %v5418_v46, %s4923_s17 }
 0x32b   : > { %638 = vrot.lane.b32.xlu0 %v5420_v48, %s4927_s23 }
 0x32e   : > { %636 = vrot.lane.b32.xlu1 %v5418_v46, %s4925_s18  ;;  %s3722_s18 = scalar_lea.sflag [#allocation4], %s5363_s13 }
 0x32f   : > { %642 = vrot.lane.b32.xlu0 %v5420_v48, %s4928_s15 }
 0x332   : > { %640 = vrot.lane.b32.xlu1 %v5418_v46, %s4927_s23 }
 0x333   : > { %646 = vrot.lane.b32.xlu0 %v5420_v48, %s4929_s14 }
 0x336   : > { %644 = vrot.lane.b32.xlu1 %v5418_v46, %s4928_s15  ;;  %s4938_s15 = smov [#allocation13]  }
 0x33a   : > { %723 = vrot.lane.b32.xlu1 %v5418_v46, %s4929_s14 }
 0x38c   : > { %v621_v50 = vpop.permute.xlu1 %620 }
 0x38d   : > { %875 = vrot.lane.b32.xlu1 %v621_v50, %s4929_s14  ;;  %v619_v51 = vpop.permute.xlu0 %618 }
 0x38e   : > { %799 = vrot.lane.b32.xlu0 %v619_v51, %s4929_s14 }
 0x390   : > { %v623_v52 = vpop.permute.xlu1 %622 }
 0x391   : > { %v5448_v53 = vpop.permute.xlu0 %626 }
 0x392   : > { %951 = vrot.lane.b32.xlu0 %v623_v52, %s4929_s14 }
 0x394   : > { %v5451_v54 = vpop.permute.xlu1 %624 }
 0x395   : > { %1027 = vrot.lane.b32.xlu1 %v5451_v54, %s4929_s14  ;;  %v5455_v55 = vpop.permute.xlu0 %630 }
 0x396   : > { %1103 = vrot.lane.b32.xlu0 %v5448_v53, %s4929_s14 }
 0x398   : > { %v5459_v56 = vpop.permute.xlu1 %628 }
 0x399   : > { %1179 = vrot.lane.b32.xlu1 %v5459_v56, %s4929_s14  ;;  %v5463_v57 = vpop.permute.xlu0 %634 }
 0x39a   : > { %1255 = vrot.lane.b32.xlu0 %v5455_v55, %s4929_s14 }
 0x39c   : > { %v5467_v58 = vpop.permute.xlu1 %632 }
 0x39d   : > { %1331 = vrot.lane.b32.xlu1 %v5467_v58, %s4929_s14  ;;  %v5471_v59 = vpop.permute.xlu0 %638 }
 0x39e   : > { %1407 = vrot.lane.b32.xlu0 %v5463_v57, %s4929_s14 }
 0x3a0   : > { %v5475_v60 = vpop.permute.xlu1 %636 }
 0x3a1   : > { %1483 = vrot.lane.b32.xlu1 %v5475_v60, %s4929_s14  ;;  %v5479_v61 = vpop.permute.xlu0 %642 }
 0x3a2   : > { %1559 = vrot.lane.b32.xlu0 %v5471_v59, %s4929_s14 }
 0x3a4   : > { %v5483_v62 = vpop.permute.xlu1 %640 }
 0x3a5   : > { %1635 = vrot.lane.b32.xlu1 %v5483_v62, %s4929_s14  ;;  %v647_v63 = vpop.permute.xlu0 %646 }
 0x3a6   : > { %1711 = vrot.lane.b32.xlu0 %v5479_v61, %s4929_s14  ;;  %4129 = vmatpush3.xpose.msk.msra.mxu1 %vm648_vm3, %v647_v63 }
 0x3a7   : > { %4133 = vmatprep.subr.mxu1 %v4924_v49 }
 0x3a8   : > { %v5491_v0 = vpop.permute.xlu1 %644 }
 0x3a9   : > { %1787 = vrot.lane.b32.xlu1 %v5491_v0, %s4929_s14  ;;  %4131 = vmatmul.mubr.msk.f32.vlgmr.msra.gmra.mrb[2].mxu1 %vm648_vm3, %v5420_v48  ;;  %s4780_s14 = sshll.u32 %s4938_s15, 4  ;;  %s4781_s14 = int_to_ptr.vmem [resolvable:$false] %s4780_s14 }
 0x3aa   : > { %2104 = vrot.lane.b32.xlu0 %v5420_v48, %s4930_s8  ;;  %4135 = vmatprep.mubr.msk.f32.mxu1 %vm4926_vm2, %v4924_v49 }
 0x3ac   : > { %v724_v1 = vpop.permute.xlu1 %723 }
 0x3ad   : > { %2180 = vrot.lane.b32.xlu1 %v5418_v46, %s4930_s8  ;;  %4134 = vmatpush3.xpose.msk.msra.mxu1 %vm648_vm3, %v724_v1 }
 0x3ae   : > { %2408 = vrot.lane.b32.xlu0 %v623_v52, %s4930_s8  ;;  %4143 = vmatprep.subr.mxu1 %v4924_v49 }
 0x3b0   : > { %4136 = vmatmul.mubr.msk.f32.vlgmr.msra.gmra.mrb[4].mxu1 %vm648_vm3, %v5418_v46 }
 0x3b1   : > { %2332 = vrot.lane.b32.xlu1 %v621_v50, %s4930_s8  ;;  %4145 = vmatprep.mubr.msk.f32.mxu1 %vm4926_vm2, %v4924_v49 }
 0x3b2   : > { %2560 = vrot.lane.b32.xlu0 %v5448_v53, %s4930_s8 }
 0x3b5   : > { %2484 = vrot.lane.b32.xlu1 %v5451_v54, %s4930_s8 }
 0x3b9   : > { %2636 = vrot.lane.b32.xlu1 %v5459_v56, %s4930_s8 }
 0x3bd   : > { %2256 = vrot.lane.b32.xlu1 %v619_v51, %s4930_s8 }
 0x3ff   : > { %v876_v2 = vpop.permute.xlu1 %875 }
 0x400   : > { %4144 = vmatpush3.xpose.msk.msra.mxu1 %vm648_vm3, %v876_v2  ;;  %v800_v3 = vpop.permute.xlu0 %799 }
 0x401   : > { %4139 = vmatpush3.xpose.msk.msra.mxu0 %vm648_vm3, %v800_v3  ;;  %4153 = vmatprep.subr.mxu1 %v4924_v49 }
 0x402   : > { %4148 = vmatprep.subr.mxu0 %v4924_v49 }
 0x403   : > { %4146 = vmatmul.mubr.msk.f32.vlgmr.msra.gmra.mrb[6].mxu1 %vm648_vm3, %v621_v50 }
 0x404   : > { %4141 = vmatmul.mubr.msk.f32.vlgmr.msra.gmra.mrb[0].mxu0 %vm648_vm3, %v619_v51  ;;  %v952_v4 = vpop.permute.xlu0 %951  ;;  %4155 = vmatprep.mubr.msk.f32.mxu1 %vm4926_vm2, %v4924_v49 }
 0x405   : > { %4149 = vmatpush3.xpose.msk.msra.mxu0 %vm648_vm3, %v952_v4  ;;  %4150 = vmatprep.mubr.msk.f32.mxu0 %vm4926_vm2, %v4924_v49 }
 0x406   : > { %4158 = vmatprep.subr.mxu0 %v4924_v49 }
 0x407   : > { %v1028_v5 = vpop.permute.xlu1 %1027 }
 0x408   : > { %4151 = vmatmul.mubr.msk.f32.vlgmr.msra.gmra.mrb[2].mxu0 %vm648_vm3, %v623_v52  ;;  %4154 = vmatpush3.xpose.msk.msra.mxu1 %vm648_vm3, %v1028_v5  ;;  %v1104_v6 = vpop.permute.xlu0 %1103 }
 0x409   : > { %4159 = vmatpush3.xpose.msk.msra.mxu0 %vm648_vm3, %v1104_v6  ;;  %4160 = vmatprep.mubr.msk.f32.mxu0 %vm4926_vm2, %v4924_v49 }
 0x40a   : > { %4163 = vmatprep.subr.mxu1 %v4924_v49  ;;  %4168 = vmatprep.subr.mxu0 %v4924_v49 }
 0x40b   : > { %v1180_v7 = vpop.permute.xlu1 %1179  ;;  %4156 = vmatmul.mubr.msk.f32.vlgmr.msra.gmra.mrb[8].mxu1 %vm648_vm3, %v5451_v54 }
 0x40c   : > { %4161 = vmatmul.mubr.msk.f32.vlgmr.msra.gmra.mrb[4].mxu0 %vm648_vm3, %v5448_v53  ;;  %4164 = vmatpush3.xpose.msk.msra.mxu1 %vm648_vm3, %v1180_v7  ;;  %v1256_v8 = vpop.permute.xlu0 %1255 }
 0x40d   : > { %4169 = vmatpush3.xpose.msk.msra.mxu0 %vm648_vm3, %v1256_v8  ;;  %4165 = vmatprep.mubr.msk.f32.mxu1 %vm4926_vm2, %v4924_v49 }
 0x40e   : > { %4170 = vmatprep.mubr.msk.f32.mxu0 %vm4926_vm2, %v4924_v49  ;;  %4173 = vmatprep.subr.mxu1 %v4924_v49 }
 0x40f   : > { %v1332_v9 = vpop.permute.xlu1 %1331  ;;  %4166 = vmatmul.mubr.msk.f32.vlgmr.msra.gmra.mrb[10].mxu1 %vm648_vm3, %v5459_v56  ;;  %4178 = vmatprep.subr.mxu0 %v4924_v49 }
 0x410   : > { %4171 = vmatmul.mubr.msk.f32.vlgmr.msra.gmra.mrb[6].mxu0 %vm648_vm3, %v5455_v55  ;;  %4174 = vmatpush3.xpose.msk.msra.mxu1 %vm648_vm3, %v1332_v9  ;;  %v1408_v10 = vpop.permute.xlu0 %1407 }
 0x411   : > { %4179 = vmatpush3.xpose.msk.msra.mxu0 %vm648_vm3, %v1408_v10  ;;  %4175 = vmatprep.mubr.msk.f32.mxu1 %vm4926_vm2, %v4924_v49 }
 0x412   : > { %4180 = vmatprep.mubr.msk.f32.mxu0 %vm4926_vm2, %v4924_v49  ;;  %4183 = vmatprep.subr.mxu1 %v4924_v49 }
 0x413   : > { %v1484_v11 = vpop.permute.xlu1 %1483  ;;  %4176 = vmatmul.mubr.msk.f32.vlgmr.msra.gmra.mrb[12].mxu1 %vm648_vm3, %v5467_v58  ;;  %4188 = vmatprep.subr.mxu0 %v4924_v49 }
 0x414   : > { %4181 = vmatmul.mubr.msk.f32.vlgmr.msra.gmra.mrb[8].mxu0 %vm648_vm3, %v5463_v57  ;;  %4184 = vmatpush3.xpose.msk.msra.mxu1 %vm648_vm3, %v1484_v11  ;;  %v1560_v12 = vpop.permute.xlu0 %1559 }
 0x415   : > { %4189 = vmatpush3.xpose.msk.msra.mxu0 %vm648_vm3, %v1560_v12  ;;  %4185 = vmatprep.mubr.msk.f32.mxu1 %vm4926_vm2, %v4924_v49 }
 0x416   : > { %4190 = vmatprep.mubr.msk.f32.mxu0 %vm4926_vm2, %v4924_v49  ;;  %4193 = vmatprep.subr.mxu1 %v4924_v49 }
 0x417   : > { %v1636_v13 = vpop.permute.xlu1 %1635  ;;  %4186 = vmatmul.mubr.msk.f32.vlgmr.msra.gmra.mrb[14].mxu1 %vm648_vm3, %v5475_v60  ;;  %4198 = vmatprep.subr.mxu0 %v4924_v49 }
 0x418   : > { %4191 = vmatmul.mubr.msk.f32.vlgmr.msra.gmra.mrb[10].mxu0 %vm648_vm3, %v5471_v59  ;;  %4194 = vmatpush3.xpose.msk.msra.mxu1 %vm648_vm3, %v1636_v13  ;;  %v1712_v14 = vpop.permute.xlu0 %1711 }
 0x419   : > { %4199 = vmatpush3.xpose.msk.msra.mxu0 %vm648_vm3, %v1712_v14  ;;  %4195 = vmatprep.mubr.msk.f32.mxu1 %vm4926_vm2, %v4924_v49 }
 0x41a   : > { %4200 = vmatprep.mubr.msk.f32.mxu0 %vm4926_vm2, %v4924_v49  ;;  %4203 = vmatprep.subr.mxu1 %v4924_v49 }
 0x41b   : > { %v1788_v15 = vpop.permute.xlu1 %1787  ;;  %4196 = vmatmul.mubr.msk.f32.vlgmr.msra.gmra.mrb[16].mxu1 %vm648_vm3, %v5483_v62  ;;  %4208 = vmatprep.subr.mxu0 %v4924_v49 }
 0x41c   : > { %4201 = vmatmul.mubr.msk.f32.vlgmr.msra.gmra.mrb[12].mxu0 %vm648_vm3, %v5479_v61  ;;  %4204 = vmatpush3.xpose.msk.msra.mxu1 %vm648_vm3, %v1788_v15  ;;  %v2105_v16 = vpop.permute.xlu0 %2104 }
 0x41d   : > { %4209 = vmatpush3.msra.mxu0 %v2105_v16  ;;  %4205 = vmatprep.mubr.msk.f32.mxu1 %vm4926_vm2, %v4924_v49 }
 0x41e   : > { %4213 = vmatprep.subr.mxu1 %v4924_v49  ;;  %4210 = vmatprep.mubr.msk.f32.mxu0 %vm4926_vm2, %v4924_v49 }
 0x41f   : > { %v2181_v17 = vpop.permute.xlu1 %2180  ;;  %4206 = vmatmul.mubr.msk.f32.vlgmr.msra.gmra.mrb[18].mxu1 %vm648_vm3, %v5491_v0  ;;  %4218 = vmatprep.subr.mxu0 %v4924_v49 }
 0x420   : > { %4214 = vmatpush3.msra.mxu1 %v2181_v17  ;;  %4215 = vmatprep.mubr.msk.f32.mxu1 %vm4926_vm2, %v4924_v49 }
 0x421   : > { %4223 = vmatprep.subr.mxu1 %v4924_v49 }
 0x47c   : > { %v719_v18 = vpop.f32.mrb[2].mxu1 }
 0x47d   : > { %v5601_v19 = vmul.f32 0.17677669, %v719_v18  ;;  %v4132_v20 = vpop.f32.mrb[3].mxu1 }
 0x47f   : > { %v1880_v21 = vsel %vm1879_vm4, %v5601_v19, -inf }
 0x480   : > { %1881 = vmax.xlane.f32.xlu0 %v1880_v21 }
 0x483   : > { %v795_v22 = vpop.f32.mrb[4].mxu1 }
 0x484   : > { %v5605_v23 = vmul.f32 0.17677669, %v795_v22  ;;  %v4137_v24 = vpop.f32.mrb[5].mxu1 }
 0x486   : > { %v1883_v25 = vsel %vm1879_vm4, %v5605_v23, -inf }
 0x487   : > { %1884 = vmax.xlane.f32.xlu1 %v1883_v25 }
 0x4d6   : > { %v947_v26 = vpop.f32.mrb[6].mxu1 }
 0x4d7   : > { %v5609_v27 = vmul.f32 0.17677669, %v947_v26  ;;  %v871_v29 = vpop.f32.mrb[0].mxu0  ;;  %v4147_v30 = vpop.f32.mrb[7].mxu1 }
 0x4d8   : > { %v4142_v31 = vpop.f32.mrb[1].mxu0  ;;  %v5611_v32 = vmul.f32 0.17677669, %v871_v29 }
 0x4d9   : > { %v1889_v33 = vsel %vm1879_vm4, %v5609_v27, -inf }
 0x4da   : > { %1890 = vmax.xlane.f32.xlu0 %v1889_v33  ;;  %v1886_v37 = vsel %vm1879_vm4, %v5611_v32, -inf  ;;  %v5665_v33 = vpop.permute.xlu1 %2332 }
 0x4db   : > { %v1023_v34 = vpop.f32.mrb[2].mxu0 }
 0x4dc   : > { %v4152_v35 = vpop.f32.mrb[3].mxu0  ;;  %v5615_v36 = vmul.f32 0.17677669, %v1023_v34 }
 0x4dd   : > { %v5671_v35 = vpop.permute.xlu0 %2408 }
 0x4de   : > { %v1099_v38 = vpop.f32.mrb[8].mxu1  ;;  %1887 = vmax.xlane.f32.xlu0 %v1886_v37  ;;  %v1892_v45 = vsel %vm1879_vm4, %v5615_v36, -inf  ;;  %v5667_v34 = vpop.permute.xlu1 %2484 }
 0x4df   : > { %v5619_v39 = vmul.f32 0.17677669, %v1099_v38  ;;  %v4157_v40 = vpop.f32.mrb[9].mxu1  ;;  %v1175_v41 = vpop.f32.mrb[4].mxu0 }
 0x4e0   : > { %v4162_v42 = vpop.f32.mrb[5].mxu0  ;;  %v5621_v43 = vmul.f32 0.17677669, %v1175_v41 }
 0x4e1   : > { %v1895_v44 = vsel %vm1879_vm4, %v5619_v39, -inf  ;;  %v5681_v38 = vpop.permute.xlu0 %2560 }
 0x4e2   : > { %1896 = vmax.xlane.f32.xlu1 %v1895_v44  ;;  %v1251_v46 = vpop.f32.mrb[10].mxu1  ;;  %1893 = vmax.xlane.f32.xlu0 %v1892_v45  ;;  %v1898_v54 = vsel %vm1879_vm4, %v5621_v43, -inf  ;;  %v5675_v37 = vpop.permute.xlu1 %2636 }
 0x4e3   : > { %v5627_v47 = vmul.f32 0.17677669, %v1251_v46  ;;  %v4167_v48 = vpop.f32.mrb[11].mxu1  ;;  %v1327_v50 = vpop.f32.mrb[6].mxu0 }
 0x4e4   : > { %v4172_v51 = vpop.f32.mrb[7].mxu0  ;;  %v5629_v52 = vmul.f32 0.17677669, %v1327_v50 }
 0x4e5   : > { %v1901_v53 = vsel %vm1879_vm4, %v5627_v47, -inf }
 0x4e6   : > { %1902 = vmax.xlane.f32.xlu1 %v1901_v53  ;;  %v1403_v56 = vpop.f32.mrb[12].mxu1  ;;  %1899 = vmax.xlane.f32.xlu0 %v1898_v54  ;;  %v1904_v6 = vsel %vm1879_vm4, %v5629_v52, -inf  ;;  %v5683_v40 = vpop.permute.xlu1 %2256 }
 0x4e7   : > { %v5635_v63 = vmul.f32 0.17677669, %v1403_v56  ;;  %v4177_v1 = vpop.f32.mrb[13].mxu1  ;;  %v1479_v2 = vpop.f32.mrb[8].mxu0 }
 0x4e8   : > { %v4182_v3 = vpop.f32.mrb[9].mxu0  ;;  %v5637_v4 = vmul.f32 0.17677669, %v1479_v2 }
 0x4e9   : > { %v1907_v5 = vsel %vm1879_vm4, %v5635_v63, -inf }
 0x4ea   : > { %1908 = vmax.xlane.f32.xlu1 %v1907_v5  ;;  %v1555_v7 = vpop.f32.mrb[14].mxu1  ;;  %1905 = vmax.xlane.f32.xlu0 %v1904_v6  ;;  %v1910_v14 = vsel %vm1879_vm4, %v5637_v4, -inf }
 0x4eb   : > { %v5643_v8 = vmul.f32 0.17677669, %v1555_v7  ;;  %v4187_v9 = vpop.f32.mrb[15].mxu1  ;;  %v1631_v10 = vpop.f32.mrb[10].mxu0 }
 0x4ec   : > { %v4192_v11 = vpop.f32.mrb[11].mxu0  ;;  %v5645_v12 = vmul.f32 0.17677669, %v1631_v10 }
 0x4ed   : > { %v1913_v13 = vsel %vm1879_vm4, %v5643_v8, -inf }
 0x4ee   : > { %1914 = vmax.xlane.f32.xlu1 %v1913_v13  ;;  %v1707_v15 = vpop.f32.mrb[16].mxu1  ;;  %1911 = vmax.xlane.f32.xlu0 %v1910_v14  ;;  %v1916_v24 = vsel %vm1879_vm4, %v5645_v12, -inf }
 0x4ef   : > { %v5651_v16 = vmul.f32 0.17677669, %v1707_v15  ;;  %v4197_v17 = vpop.f32.mrb[17].mxu1  ;;  %v1783_v18 = vpop.f32.mrb[12].mxu0 }
 0x4f0   : > { %v4202_v20 = vpop.f32.mrb[13].mxu0  ;;  %v5653_v21 = vmul.f32 0.17677669, %v1783_v18 }
 0x4f1   : > { %v1919_v22 = vsel %vm1879_vm4, %v5651_v16, -inf }
 0x4f2   : > { %1920 = vmax.xlane.f32.xlu1 %v1919_v22  ;;  %v1859_v25 = vpop.f32.mrb[18].mxu1  ;;  %1917 = vmax.xlane.f32.xlu0 %v1916_v24  ;;  %v1922_v31 = vsel %vm1879_vm4, %v5653_v21, -inf }
 0x4f3   : > { %v5659_v26 = vmul.f32 0.17677669, %v1859_v25  ;;  %v4207_v29 = vpop.f32.mrb[19].mxu1 }
 0x4f5   : > { %v1925_v30 = vsel %vm1879_vm4, %v5659_v26, -inf }
 0x4f6   : > { %1926 = vmax.xlane.f32.xlu1 %v1925_v30  ;;  %1923 = vmax.xlane.f32.xlu0 %v1922_v31 }
 0x507   : > { %2788 = vrot.lane.b32.xlu1 %v5467_v58, %s4930_s8 }
 0x50b   : > { %2940 = vrot.lane.b32.xlu1 %v5475_v60, %s4930_s8 }
 0x50c   : > { %2712 = vrot.lane.b32.xlu0 %v5455_v55, %s4930_s8 }
 0x50d   : > { %v1882_v41 = vpop.xlane.xlu0 %1881 }
 0x50e   : > { %v1928_v58 = vsub.f32 %v5601_v19, %v1882_v41 }
 0x510   : > { %2864 = vrot.lane.b32.xlu0 %v5463_v57, %s4930_s8  ;;  %v1944_v45 = vmul.f32 1.442695, %v1928_v58 }
 0x512   : > { %4521 = vpow2.f32 %v1944_v45 }
 0x514   : > { %v1885_v42 = vpop.xlane.xlu1 %1884 }
 0x515   : > { %v1929_v44 = vsub.f32 %v5605_v23, %v1885_v42 }
 0x517   : > { %v1946_v60 = vmul.f32 1.442695, %v1929_v44 }
 0x519   : > { %4523 = vpow2.f32 %v1946_v60 }
 0x51c   : > { %v5687_v46 = vpop.eup %4521 }
 0x51d   : > { %v1976_v48 = vsel %vm1879_vm4, %v5687_v46, 0.0 }
 0x523   : > { %v5689_v55 = vpop.eup %4523 }
 0x524   : > { %v1979_v57 = vsel %vm1879_vm4, %v5689_v55, 0.0 }
 0x52f   : > { %1980 = vadd.xlane.f32.xlu1 %v1979_v57  ;;  %1977 = vadd.xlane.f32.xlu0 %v1976_v48 }
 0x567   : > { %v1891_v50 = vpop.xlane.xlu0 %1890 }
 0x568   : > { %v1931_v19 = vsub.f32 %v5609_v27, %v1891_v50 }
 0x56a   : > { %v1950_v23 = vmul.f32 1.442695, %v1931_v19 }
 0x56b   : > { %v1888_v51 = vpop.xlane.xlu0 %1887 }
 0x56c   : > { %4525 = vpow2.f32 %v1950_v23  ;;  %v1930_v53 = vsub.f32 %v5611_v32, %v1888_v51 }
 0x56e   : > { %v1948_v54 = vmul.f32 1.442695, %v1930_v53 }
 0x56f   : > { %v1897_v56 = vpop.xlane.xlu1 %1896  ;;  %v1894_v1 = vpop.xlane.xlu0 %1893 }
 0x570   : > { %4527 = vpow2.f32 %v1948_v54  ;;  %v1933_v2 = vsub.f32 %v5619_v39, %v1897_v56  ;;  %v1932_v3 = vsub.f32 %v5615_v36, %v1894_v1 }
 0x572   : > { %v1954_v5 = vmul.f32 1.442695, %v1933_v2  ;;  %v1952_v6 = vmul.f32 1.442695, %v1932_v3 }
 0x573   : > { %v1903_v7 = vpop.xlane.xlu1 %1902  ;;  %v1900_v9 = vpop.xlane.xlu0 %1899 }
 0x574   : > { %4529 = vpow2.f32 %v1954_v5  ;;  %v1935_v27 = vsub.f32 %v5627_v47, %v1903_v7  ;;  %v1934_v10 = vsub.f32 %v5621_v43, %v1900_v9 }
 0x575   : > { %4531 = vpow2.f32 %v1952_v6 }
 0x576   : > { %v5701_v11 = vpop.eup %4525  ;;  %v1958_v32 = vmul.f32 1.442695, %v1935_v27  ;;  %v1956_v13 = vmul.f32 1.442695, %v1934_v10 }
 0x577   : > { %v1909_v14 = vpop.xlane.xlu1 %1908  ;;  %v1906_v15 = vpop.xlane.xlu0 %1905  ;;  %v1985_v39 = vsel %vm1879_vm4, %v5701_v11, 0.0 }
 0x578   : > { %4533 = vpow2.f32 %v1958_v32  ;;  %v1937_v36 = vsub.f32 %v5635_v63, %v1909_v14  ;;  %v1936_v17 = vsub.f32 %v5629_v52, %v1906_v15  ;;  %1986 = vadd.xlane.f32.xlu1 %v1985_v39 }
 0x579   : > { %4535 = vpow2.f32 %v1956_v13 }
 0x57a   : > { %v5707_v47 = vpop.eup %4527  ;;  %v1962_v43 = vmul.f32 1.442695, %v1937_v36  ;;  %v1960_v18 = vmul.f32 1.442695, %v1936_v17 }
 0x57b   : > { %v1915_v20 = vpop.xlane.xlu1 %1914  ;;  %v1912_v22 = vpop.xlane.xlu0 %1911  ;;  %v1982_v24 = vsel %vm1879_vm4, %v5707_v47, 0.0 }
 0x57c   : > { %4537 = vpow2.f32 %v1962_v43  ;;  %v1939_v25 = vsub.f32 %v5643_v8, %v1915_v20  ;;  %v1938_v29 = vsub.f32 %v5637_v4, %v1912_v22  ;;  %1983 = vadd.xlane.f32.xlu0 %v1982_v24 }
 0x57d   : > { %4539 = vpow2.f32 %v1960_v18 }
 0x57e   : > { %v5713_v63 = vpop.eup %4529  ;;  %v1966_v52 = vmul.f32 1.442695, %v1939_v25  ;;  %v1964_v30 = vmul.f32 1.442695, %v1938_v29 }
 0x57f   : > { %v5715_v31 = vpop.eup %4531  ;;  %v1921_v41 = vpop.xlane.xlu1 %1920  ;;  %v1991_v58 = vsel %vm1879_vm4, %v5713_v63, 0.0 }
 0x580   : > { %v1918_v42 = vpop.xlane.xlu0 %1917  ;;  %4541 = vpow2.f32 %v1966_v52  ;;  %v1941_v44 = vsub.f32 %v5651_v16, %v1921_v41  ;;  %1992 = vadd.xlane.f32.xlu1 %v1991_v58  ;;  %v1988_v4 = vsel %vm1879_vm4, %v5715_v31, 0.0 }
 0x581   : > { %v1940_v8 = vsub.f32 %v5645_v12, %v1918_v42  ;;  %4543 = vpow2.f32 %v1964_v30  ;;  %1989 = vadd.xlane.f32.xlu0 %v1988_v4 }
 0x582   : > { %v5723_v45 = vpop.eup %4533  ;;  %v1970_v60 = vmul.f32 1.442695, %v1941_v44 }
 0x583   : > { %v1968_v57 = vmul.f32 1.442695, %v1940_v8  ;;  %v5725_v48 = vpop.eup %4535  ;;  %v1927_v50 = vpop.xlane.xlu1 %1926  ;;  %v1997_v23 = vsel %vm1879_vm4, %v5723_v45, 0.0 }
 0x584   : > { %v1924_v19 = vpop.xlane.xlu0 %1923  ;;  %4545 = vpow2.f32 %v1970_v60  ;;  %v1943_v12 = vsub.f32 %v5659_v26, %v1927_v50  ;;  %1998 = vadd.xlane.f32.xlu1 %v1997_v23  ;;  %v1994_v51 = vsel %vm1879_vm4, %v5725_v48, 0.0 }
 0x585   : > { %v1942_v16 = vsub.f32 %v5653_v21, %v1924_v19  ;;  %4547 = vpow2.f32 %v1968_v57  ;;  %1995 = vadd.xlane.f32.xlu0 %v1994_v51 }
 0x586   : > { %v5733_v53 = vpop.eup %4537  ;;  %v1974_v54 = vmul.f32 1.442695, %v1943_v12 }
 0x587   : > { %v1972_v56 = vmul.f32 1.442695, %v1942_v16  ;;  %v5735_v1 = vpop.eup %4539  ;;  %v2003_v2 = vsel %vm1879_vm4, %v5733_v53, 0.0  ;;  %v5773_v39 = vpop.permute.xlu1 %2788 }
 0x588   : > { %4549 = vpow2.f32 %v1974_v54  ;;  %2004 = vadd.xlane.f32.xlu1 %v2003_v2  ;;  %v2000_v21 = vsel %vm1879_vm4, %v5735_v1, 0.0  ;;  %v5775_v36 = vpop.permute.xlu0 %2712 }
 0x589   : > { %4551 = vpow2.f32 %v1972_v56  ;;  %2001 = vadd.xlane.f32.xlu0 %v2000_v21 }
 0x58a   : > { %v5741_v26 = vpop.eup %4541 }
 0x58b   : > { %v5743_v3 = vpop.eup %4543  ;;  %v2009_v5 = vsel %vm1879_vm4, %v5741_v26, 0.0  ;;  %v5777_v17 = vpop.permute.xlu1 %2940 }
 0x58c   : > { %2010 = vadd.xlane.f32.xlu1 %v2009_v5  ;;  %v2006_v6 = vsel %vm1879_vm4, %v5743_v3, 0.0  ;;  %v5779_v43 = vpop.permute.xlu0 %2864 }
 0x58d   : > { %2007 = vadd.xlane.f32.xlu0 %v2006_v6 }
 0x58e   : > { %v5749_v7 = vpop.eup %4545 }
 0x58f   : > { %v5751_v9 = vpop.eup %4547  ;;  %v2015_v27 = vsel %vm1879_vm4, %v5749_v7, 0.0 }
 0x590   : > { %2016 = vadd.xlane.f32.xlu1 %v2015_v27  ;;  %v2012_v10 = vsel %vm1879_vm4, %v5751_v9, 0.0 }
 0x591   : > { %2013 = vadd.xlane.f32.xlu0 %v2012_v10 }
 0x592   : > { %v5757_v32 = vpop.eup %4549 }
 0x593   : > { %v5759_v13 = vpop.eup %4551  ;;  %v2021_v14 = vsel %vm1879_vm4, %v5757_v32, 0.0 }
 0x594   : > { %2022 = vadd.xlane.f32.xlu1 %v2021_v14  ;;  %v2018_v15 = vsel %vm1879_vm4, %v5759_v13, 0.0 }
 0x595   : > { %2019 = vadd.xlane.f32.xlu0 %v2018_v15 }
 0x5a5   : > { %3092 = vrot.lane.b32.xlu1 %v5483_v62, %s4930_s8 }
 0x5a9   : > { %3244 = vrot.lane.b32.xlu1 %v5491_v0, %s4930_s8 }
 0x5ab   : > { %3016 = vrot.lane.b32.xlu0 %v5471_v59, %s4930_s8 }
 0x5af   : > { %3168 = vrot.lane.b32.xlu0 %v5479_v61, %s4930_s8  ;;  %s4782_s8 = scalar_lea.vmem %s4781_s14, 512 }
 0x5bc   : > { %v1981_v18 = vpop.xlane.xlu1 %1980  ;;  %v1978_v20 = vpop.xlane.xlu0 %1977 }
 0x5bd   : > { %4553 = vrcp.f32 %v1981_v18 }
 0x5be   : > { %4555 = vrcp.f32 %v1978_v20 }
 0x5c7   : > { %v4554_v62 = vpop.eup %4553 }
 0x5c8   : > { %v4556_v0 = vpop.eup %4555  ;;  %v2041_v22 = vmul.f32 %v4554_v62, %v1981_v18 }
 0x5c9   : > { %v2040_v24 = vmul.f32 %v4556_v0, %v1978_v20 }
 0x5ca   : > { %v2057_v59 = vsub.f32 2.0, %v2041_v22 }
 0x5cb   : > { %v2056_v25 = vsub.f32 2.0, %v2040_v24 }
 0x5cc   : > { %v2073_v29 = vmul.f32 %v4554_v62, %v2057_v59 }
 0x5cd   : > { %v2072_v61 = vmul.f32 %v4556_v0, %v2056_v25 }
 0x5ce   : > { %v2089_v52 = vmul.f32 %v5689_v55, %v2073_v29 }
 0x5cf   : > { %v2088_v30 = vmul.f32 %v5687_v46, %v2072_v61 }
 0x5d0   : > { %4216 = vmatmul.mubr.msk.f32.vlgmr.msra.gmra.mrb[20].mxu1 %vm1879_vm4, %v2089_v52 }
 0x5d1   : > { %4211 = vmatmul.mubr.msk.f32.vlgmr.msra.gmra.mrb[14].mxu0 %vm1879_vm4, %v2088_v30  ;;  %4224 = vmatpush3.msra.mxu1 %v5665_v33 }
 0x5d2   : > { %4219 = vmatpush3.msra.mxu0 %v5683_v40  ;;  %4225 = vmatprep.mubr.msk.f32.mxu1 %vm4926_vm2, %v4924_v49 }
 0x5d3   : > { %4233 = vmatprep.subr.mxu1 %v4924_v49  ;;  %4220 = vmatprep.mubr.msk.f32.mxu0 %vm4926_vm2, %v4924_v49 }
 0x5d4   : > { %4228 = vmatprep.subr.mxu0 %v4924_v49 }
 0x605   : > { %v1987_v55 = vpop.xlane.xlu1 %1986 }
 0x606   : > { %4557 = vrcp.f32 %v1987_v55 }
 0x609   : > { %v1984_v46 = vpop.xlane.xlu0 %1983 }
 0x60a   : > { %4559 = vrcp.f32 %v1984_v46 }
 0x60d   : > { %v1993_v41 = vpop.xlane.xlu1 %1992 }
 0x60e   : > { %4561 = vrcp.f32 %v1993_v41  ;;  %v1990_v42 = vpop.xlane.xlu0 %1989 }
 0x60f   : > { %4563 = vrcp.f32 %v1990_v42 }
 0x610   : > { %v4558_v33 = vpop.eup %4557 }
 0x611   : > { %v2043_v40 = vmul.f32 %v4558_v33, %v1987_v55  ;;  %v1999_v58 = vpop.xlane.xlu1 %1998 }
 0x612   : > { %4565 = vrcp.f32 %v1999_v58  ;;  %v1996_v44 = vpop.xlane.xlu0 %1995 }
 0x613   : > { %v2059_v8 = vsub.f32 2.0, %v2043_v40  ;;  %4567 = vrcp.f32 %v1996_v44 }
 0x614   : > { %v4560_v4 = vpop.eup %4559 }
 0x615   : > { %v2075_v60 = vmul.f32 %v4558_v33, %v2059_v8  ;;  %v2042_v57 = vmul.f32 %v4560_v4, %v1984_v46  ;;  %v2005_v50 = vpop.xlane.xlu1 %2004 }
 0x616   : > { %4569 = vrcp.f32 %v2005_v50  ;;  %v2002_v19 = vpop.xlane.xlu0 %2001 }
 0x617   : > { %v2091_v23 = vmul.f32 %v5701_v11, %v2075_v60  ;;  %v2058_v12 = vsub.f32 2.0, %v2042_v57  ;;  %4571 = vrcp.f32 %v2002_v19 }
 0x618   : > { %v4562_v16 = vpop.eup %4561 }
 0x619   : > { %v4564_v51 = vpop.eup %4563  ;;  %v2074_v54 = vmul.f32 %v4560_v4, %v2058_v12  ;;  %v2045_v56 = vmul.f32 %v4562_v16, %v1993_v41  ;;  %4226 = vmatmul.mubr.msk.f32.vlgmr.msra.gmra.mrb[22].mxu1 %vm1879_vm4, %v2091_v23  ;;  %v2011_v2 = vpop.xlane.xlu1 %2010 }
 0x61a   : > { %v2044_v21 = vmul.f32 %v4564_v51, %v1990_v42  ;;  %4234 = vmatpush3.msra.mxu1 %v5667_v34  ;;  %4573 = vrcp.f32 %v2011_v2  ;;  %v2008_v5 = vpop.xlane.xlu0 %2007  ;;  %4235 = vmatprep.mubr.msk.f32.mxu1 %vm4926_vm2, %v4924_v49 }
 0x61b   : > { %v2090_v6 = vmul.f32 %v5707_v47, %v2074_v54  ;;  %v2061_v11 = vsub.f32 2.0, %v2045_v56  ;;  %4575 = vrcp.f32 %v2008_v5  ;;  %4243 = vmatprep.subr.mxu1 %v4924_v49 }
 0x61c   : > { %v4566_v27 = vpop.eup %4565  ;;  %v2060_v10 = vsub.f32 2.0, %v2044_v21 }
 0x61d   : > { %v4568_v14 = vpop.eup %4567  ;;  %v2077_v15 = vmul.f32 %v4562_v16, %v2061_v11  ;;  %v2047_v18 = vmul.f32 %v4566_v27, %v1999_v58  ;;  %v2017_v20 = vpop.xlane.xlu1 %2016  ;;  %4221 = vmatmul.mubr.msk.f32.vlgmr.msra.gmra.mrb[16].mxu0 %vm1879_vm4, %v2090_v6 }
 0x61e   : > { %v2076_v34 = vmul.f32 %v4564_v51, %v2060_v10  ;;  %v2046_v62 = vmul.f32 %v4568_v14, %v1996_v44  ;;  %4577 = vrcp.f32 %v2017_v20  ;;  %4229 = vmatpush3.msra.mxu0 %v5671_v35  ;;  %v2014_v0 = vpop.xlane.xlu0 %2013  ;;  %4230 = vmatprep.mubr.msk.f32.mxu0 %vm4926_vm2, %v4924_v49 }
 0x61f   : > { %v2093_v47 = vmul.f32 %v5713_v63, %v2077_v15  ;;  %v2063_v22 = vsub.f32 2.0, %v2047_v18  ;;  %4579 = vrcp.f32 %v2014_v0  ;;  %4238 = vmatprep.subr.mxu0 %v4924_v49 }
 0x620   : > { %v4570_v24 = vpop.eup %4569  ;;  %v2092_v59 = vmul.f32 %v5715_v31, %v2076_v34  ;;  %v2062_v25 = vsub.f32 2.0, %v2046_v62 }
 0x621   : > { %v4572_v29 = vpop.eup %4571  ;;  %v2079_v61 = vmul.f32 %v4566_v27, %v2063_v22  ;;  %v2049_v52 = vmul.f32 %v4570_v24, %v2005_v50  ;;  %4236 = vmatmul.mubr.msk.f32.vlgmr.msra.gmra.mrb[24].mxu1 %vm1879_vm4, %v2093_v47  ;;  %v2023_v35 = vpop.xlane.xlu1 %2022 }
 0x622   : > { %v2078_v30 = vmul.f32 %v4568_v14, %v2062_v25  ;;  %v2048_v55 = vmul.f32 %v4572_v29, %v2002_v19  ;;  %4244 = vmatpush3.msra.mxu1 %v5675_v37  ;;  %4581 = vrcp.f32 %v2023_v35  ;;  %4231 = vmatmul.mubr.msk.f32.vlgmr.msra.gmra.mrb[18].mxu0 %vm1879_vm4, %v2092_v59  ;;  %v2020_v63 = vpop.xlane.xlu0 %2019  ;;  %v3396_v59 = vld [vmem:[%s5379_s9 + $0x8] sm:$0xff] }
 0x623   : > { %v2095_v46 = vmul.f32 %v5723_v45, %v2079_v61  ;;  %v2065_v41 = vsub.f32 2.0, %v2049_v52  ;;  %4239 = vmatpush3.msra.mxu0 %v5681_v38  ;;  %4583 = vrcp.f32 %v2020_v63  ;;  %4240 = vmatprep.mubr.msk.f32.mxu0 %vm4926_vm2, %v4924_v49 }
 0x624   : > { %v4574_v31 = vpop.eup %4573  ;;  %v2094_v42 = vmul.f32 %v5725_v48, %v2078_v30  ;;  %v2064_v33 = vsub.f32 2.0, %v2048_v55  ;;  %4245 = vmatprep.mubr.msk.f32.mxu1 %vm4926_vm2, %v4924_v49  ;;  %4248 = vmatprep.subr.mxu0 %v4924_v49  ;;  %v3397_v30 = vld [vmem:[%s5379_s9 + $0x10] sm:$0xff]  ;;  %v3398_v55 = vld [vmem:[%s5379_s9 + $0x18] sm:$0xff] }
 0x625   : > { %v4576_v37 = vpop.eup %4575  ;;  %v2081_v40 = vmul.f32 %v4570_v24, %v2065_v41  ;;  %v2051_v58 = vmul.f32 %v4574_v31, %v2011_v2  ;;  %4253 = vmatprep.subr.mxu1 %v4924_v49  ;;  %4246 = vmatmul.mubr.msk.f32.vlgmr.msra.gmra.mrb[26].mxu1 %vm1879_vm4, %v2095_v46  ;;  %v3093_v23 = vpop.permute.xlu1 %3092  ;;  %v3395_v24 = vld [vmem:[%s5379_s9] sm:$0xff]  ;;  %v4341_v46 = vpack.c.bf16 %v3398_v55, %v3397_v30  ;;  %s4936_s9 = smov 24  }
 0x626   : > { %v2080_v38 = vmul.f32 %v4572_v29, %v2064_v33  ;;  %v2050_v45 = vmul.f32 %v4576_v37, %v2008_v5  ;;  %4254 = vmatpush3.msra.mxu1 %v5773_v39  ;;  %4241 = vmatmul.mubr.msk.f32.vlgmr.msra.gmra.mrb[20].mxu0 %vm1879_vm4, %v2094_v42  ;;  %v3017_v54 = vpop.permute.xlu0 %3016  ;;  %v4337_v29 = vpack.c.bf16 %v3396_v59, %v3395_v24  ;;  %v4595_v59 = vld [vmem:[%s5395_s5] sm:$0xff] }
 0x627   : > { %v2097_v48 = vmul.f32 %v5733_v53, %v2081_v40  ;;  %v2067_v44 = vsub.f32 2.0, %v2051_v58  ;;  %4249 = vmatpush3.msra.mxu0 %v5775_v36  ;;  %4250 = vmatprep.mubr.msk.f32.mxu0 %vm4926_vm2, %v4924_v49 }
 0x628   : > { %v4578_v8 = vpop.eup %4577  ;;  %v2096_v4 = vmul.f32 %v5735_v1, %v2080_v38  ;;  %v2066_v60 = vsub.f32 2.0, %v2050_v45  ;;  %4255 = vmatprep.mubr.msk.f32.mxu1 %vm4926_vm2, %v4924_v49  ;;  %4258 = vmatprep.subr.mxu0 %v4924_v49 }
 0x629   : > { %v4580_v39 = vpop.eup %4579  ;;  %v2083_v57 = vmul.f32 %v4574_v31, %v2067_v44  ;;  %v2053_v50 = vmul.f32 %v4578_v8, %v2017_v20  ;;  %4263 = vmatprep.subr.mxu1 %v4924_v49  ;;  %4256 = vmatmul.mubr.msk.f32.vlgmr.msra.gmra.mrb[28].mxu1 %vm1879_vm4, %v2097_v48  ;;  %v3245_v27 = vpop.permute.xlu1 %3244 }
 0x62a   : > { %v2082_v53 = vmul.f32 %v4576_v37, %v2066_v60  ;;  %v2052_v36 = vmul.f32 %v4580_v39, %v2014_v0  ;;  %4264 = vmatpush3.msra.mxu1 %v5777_v17  ;;  %4251 = vmatmul.mubr.msk.f32.vlgmr.msra.gmra.mrb[22].mxu0 %vm1879_vm4, %v2096_v4  ;;  %v3169_v10 = vpop.permute.xlu0 %3168 }
 0x62b   : > { %v2099_v1 = vmul.f32 %v5741_v26, %v2083_v57  ;;  %v2069_v19 = vsub.f32 2.0, %v2053_v50  ;;  %4259 = vmatpush3.msra.mxu0 %v5779_v43  ;;  %4260 = vmatprep.mubr.msk.f32.mxu0 %vm4926_vm2, %v4924_v49 }
 0x62c   : > { %v4582_v12 = vpop.eup %4581  ;;  %v2098_v16 = vmul.f32 %v5743_v3, %v2082_v53  ;;  %v2068_v51 = vsub.f32 2.0, %v2052_v36  ;;  %4265 = vmatprep.mubr.msk.f32.mxu1 %vm4926_vm2, %v4924_v49  ;;  %4268 = vmatprep.subr.mxu0 %v4924_v49 }
 0x62d   : > { %v4584_v17 = vpop.eup %4583  ;;  %v2085_v56 = vmul.f32 %v4578_v8, %v2069_v19  ;;  %v2055_v26 = vmul.f32 %v4582_v12, %v2023_v35  ;;  %4273 = vmatprep.subr.mxu1 %v4924_v49  ;;  %4266 = vmatmul.mubr.msk.f32.vlgmr.msra.gmra.mrb[30].mxu1 %vm1879_vm4, %v2099_v1 }
 0x62e   : > { %v2084_v43 = vmul.f32 %v4580_v39, %v2068_v51  ;;  %v2054_v2 = vmul.f32 %v4584_v17, %v2020_v63  ;;  %4261 = vmatmul.mubr.msk.f32.vlgmr.msra.gmra.mrb[24].mxu0 %vm1879_vm4, %v2098_v16  ;;  %4274 = vmatpush3.msra.mxu1 %v3093_v23 }
 0x62f   : > { %v2101_v3 = vmul.f32 %v5749_v7, %v2085_v56  ;;  %v2071_v21 = vsub.f32 2.0, %v2055_v26  ;;  %4269 = vmatpush3.msra.mxu0 %v3017_v54  ;;  %4270 = vmatprep.mubr.msk.f32.mxu0 %vm4926_vm2, %v4924_v49 }
 0x630   : > { %v2100_v5 = vmul.f32 %v5751_v9, %v2084_v43  ;;  %v2070_v6 = vsub.f32 2.0, %v2054_v2  ;;  %4275 = vmatprep.mubr.msk.f32.mxu1 %vm4926_vm2, %v4924_v49  ;;  %4278 = vmatprep.subr.mxu0 %v4924_v49 }
 0x631   : > { %v2087_v11 = vmul.f32 %v4582_v12, %v2071_v21  ;;  %4283 = vmatprep.subr.mxu1 %v4924_v49  ;;  %4276 = vmatmul.mubr.msk.f32.vlgmr.msra.gmra.mrb[32].mxu1 %vm1879_vm4, %v2101_v3 }
 0x632   : > { %v2086_v7 = vmul.f32 %v4584_v17, %v2070_v6  ;;  %4271 = vmatmul.mubr.msk.f32.vlgmr.msra.gmra.mrb[26].mxu0 %vm1879_vm4, %v2100_v5  ;;  %4284 = vmatpush3.msra.mxu1 %v3245_v27 }
 0x633   : > { %v2103_v14 = vmul.f32 %v5757_v32, %v2087_v11  ;;  %4279 = vmatpush3.msra.mxu0 %v3169_v10  ;;  %4280 = vmatprep.mubr.msk.f32.mxu0 %vm4926_vm2, %v4924_v49 }
 0x634   : > { %v2102_v9 = vmul.f32 %v5759_v13, %v2086_v7  ;;  %4285 = vmatprep.mubr.msk.f32.mxu1 %vm4926_vm2, %v4924_v49  ;;  %4338 = vmatprep.subr.bf16.mxu0 %v4337_v29 }
 0x635   : > { %4286 = vmatmul.mubr.msk.f32.vlgmr.msra.gmra.mrb[34].mxu1 %vm1879_vm4, %v2103_v14 }
 0x636   : > { %4281 = vmatmul.mubr.msk.f32.vlgmr.msra.gmra.mrb[28].mxu0 %vm1879_vm4, %v2102_v9 }
 0x637   : > { %4340 = vmatpush3.bf16.msra.mxu0 %v4337_v29 }
 0x638   : > { %4342 = vmatprep.subr.bf16.mxu0 %v4341_v46 }
 0x63b   : > { %4344 = vmatpush3.bf16.msra.mxu0 %v4341_v46 }
 0x6a3   : > { %v5863_v15 = vpop.f32.mrb[20].mxu1 }
 0x6a4   : > { %v5865_v18 = vpop.f32.mrb[14].mxu0  ;;  %v4217_v32 = vpop.f32.mrb[21].mxu1 }
 0x6a5   : > { %v4212_v20 = vpop.f32.mrb[15].mxu0 }
 0x6a6   : > { %v3401_v20 = vsub.s32 3, %v5410_v28 }
 0x6ec   : > { %v2404_v34 = vpop.f32.mrb[22].mxu1 }
 0x6ed   : > { %3324 = vrot.lane.b32.xlu1 %v2404_v34, %s4931_s28  ;;  %v4227_v62 = vpop.f32.mrb[23].mxu1  ;;  %v5883_v34 = vld [vmem:[%s5389_s21] sm:$0xff]  ;;  %s3735_s21 = sshll.u32 %s5395_s5, 4  ;;  %s5931_s21 = int_to_ptr.vmem [resolvable:$true] %s3735_s21 }
 0x6ee   : > { %v3402_v62 = vrot.slane %v5883_v34, %v3401_v20  ;;  %s4776_s23 = scalar_lea.vmem %s5931_s21, 256  ;;  %p4783_p8 = scmp.lt.s32.totalorder %s5931_s21, %s4781_s14 }
 0x6ef   : > { %p4777_p0 = scmp.ne.s32.totalorder %s5931_s21, %s4776_s23  ;;  %p4784_p13 = scmp.lt.s32.totalorder %s4782_s8, %s4776_s23 }
 0x6f0   : > { %v2328_v13 = vpop.f32.mrb[16].mxu0 }
 0x6f1   : > { %3322 = vrot.lane.b32.xlu0 %v2328_v13, %s4931_s28  ;;  %v4222_v0 = vpop.f32.mrb[17].mxu0  ;;  %p4778_p7 = pnand %p4777_p0, %p6083_p2  ;;  %p4785_p11 = por %p4784_p13, %p4783_p8 }
 0x6f3   : > { %p4779_p4 = pneg %p4778_p7 }
 0x6f4   : > { %v2556_v49 = vpop.f32.mrb[24].mxu1 }
 0x6f5   : > { %v2480_v47 = vpop.f32.mrb[18].mxu0  ;;  %3332 = vrot.lane.b32.xlu1 %v2556_v49, %s4932_s26  ;;  %v4237_v22 = vpop.f32.mrb[25].mxu1  ;;  %p4786_p12 = pnand %p4785_p11, %p4779_p4 }
 0x6f6   : > { %3330 = vrot.lane.b32.xlu0 %v2480_v47, %s4932_s26  ;;  %v4232_v25 = vpop.f32.mrb[19].mxu0  ;;  %v4594_v22 = vld [vmem:[%s5395_s5 + $0x8] sm:$0xff] }
 0x6f8   : > { %v2708_v61 = vpop.f32.mrb[26].mxu1 }
 0x6f9   : > { %v2632_v52 = vpop.f32.mrb[20].mxu0  ;;  %3340 = vrot.lane.b32.xlu1 %v2708_v61, %s4933_s20  ;;  %v4247_v35 = vpop.f32.mrb[27].mxu1 }
 0x6fa   : > { %3338 = vrot.lane.b32.xlu0 %v2632_v52, %s4933_s20  ;;  %v4242_v63 = vpop.f32.mrb[21].mxu0 }
 0x6fc   : > { %v2860_v41 = vpop.f32.mrb[28].mxu1 }
 0x6fd   : > { %v2784_v31 = vpop.f32.mrb[22].mxu0  ;;  %3348 = vrot.lane.b32.xlu1 %v2860_v41, %s4934_s12  ;;  %v4257_v42 = vpop.f32.mrb[29].mxu1 }
 0x6fe   : > { %3346 = vrot.lane.b32.xlu0 %v2784_v31, %s4934_s12  ;;  %v4252_v33 = vpop.f32.mrb[23].mxu0 }
 0x700   : > { %v3012_v37 = vpop.f32.mrb[30].mxu1 }
 0x701   : > { %v2936_v40 = vpop.f32.mrb[24].mxu0  ;;  %3356 = vrot.lane.b32.xlu1 %v3012_v37, %s4935_s10  ;;  %v4267_v58 = vpop.f32.mrb[31].mxu1  ;;  %v3524_v37 = vld [vmem:[%s5381_s27] sm:$0xff] }
 0x702   : > { %3354 = vrot.lane.b32.xlu0 %v2936_v40, %s4935_s10  ;;  %v4262_v38 = vpop.f32.mrb[25].mxu0  ;;  %v3525_v40 = vld [vmem:[%s5381_s27 + $0x8] sm:$0xff] }
 0x703   : > { %v4345_v58 = vpack.c.bf16 %v3525_v40, %v3524_v37  ;;  %v3526_v38 = vld [vmem:[%s5381_s27 + $0x10] sm:$0xff] }
 0x704   : > { %v3164_v45 = vpop.f32.mrb[32].mxu1 }
 0x705   : > { %v3088_v48 = vpop.f32.mrb[26].mxu0  ;;  %3364 = vrot.lane.b32.xlu1 %v3164_v45, %s4936_s9  ;;  %v4277_v44 = vpop.f32.mrb[33].mxu1  ;;  %4346 = vmatprep.subr.bf16.mxu1 %v4345_v58  ;;  %v3527_v45 = vld [vmem:[%s5381_s27 + $0x18] sm:$0xff]  ;;  %s6081_s27 = sld [smem:[#allocation22_spill]] }
 0x706   : > { %3362 = vrot.lane.b32.xlu0 %v3088_v48, %s4936_s9  ;;  %v4272_v8 = vpop.f32.mrb[27].mxu0  ;;  %4348 = vmatpush3.bf16.msra.mxu1 %v4345_v58  ;;  %v4349_v48 = vpack.c.bf16 %v3527_v45, %v3526_v38 }
 0x708   : > { %v3316_v4 = vpop.f32.mrb[34].mxu1  ;;  %4350 = vmatprep.subr.bf16.mxu1 %v4349_v48 }
 0x709   : > { %v3240_v60 = vpop.f32.mrb[28].mxu0  ;;  %3372 = vrot.lane.b32.xlu1 %v3316_v4, %s4937_s1  ;;  %v4287_v39 = vpop.f32.mrb[35].mxu1 }
 0x70a   : > { %3370 = vrot.lane.b32.xlu0 %v3240_v60, %s4937_s1  ;;  %v4282_v57 = vpop.f32.mrb[29].mxu0  ;;  %4352 = vmatpush3.bf16.msra.mxu1 %v4349_v48 }
 0x75f   : > { %v3325_v50 = vpop.permute.xlu1 %3324 }
 0x760   : > { %v3377_v17 = vsel %vm648_vm3, %v5863_v15, %v3325_v50  ;;  %v3514_v50 = vsub.s32 4, %v5410_v28 }
 0x763   : > { %v3323_v53 = vpop.permute.xlu0 %3322 }
 0x764   : > { %v3376_v56 = vsel %vm648_vm3, %v5865_v18, %v3323_v53  ;;  %v3520_v53 = vsub.s32 5, %v5410_v28 }
 0x767   : > { %v3333_v36 = vpop.permute.xlu1 %3332 }
 0x768   : > { %v3331_v1 = vpop.permute.xlu0 %3330  ;;  %v3379_v26 = vsel %vm1879_vm4, %v3377_v17, %v3333_v36  ;;  %v3515_v36 = vrot.slane %v5883_v34, %v3514_v50 }
 0x769   : > { %v3378_v2 = vsel %vm1879_vm4, %v3376_v56, %v3331_v1 }
 0x76b   : > { %v3341_v19 = vpop.permute.xlu1 %3340 }
 0x76c   : > { %v3339_v23 = vpop.permute.xlu0 %3338  ;;  %v3382_v3 = vsel %vm3380_vm5, %v3379_v26, %v3341_v19  ;;  %v3528_v26 = vld [vmem:[%s5387_s16] sm:$0xff] }
 0x76d   : > { %v3381_v5 = vsel %vm3380_vm5, %v3378_v2, %v3339_v23  ;;  %v3521_v23 = vrot.slane %v5883_v34, %v3520_v53 }
 0x76f   : > { %v3349_v12 = vpop.permute.xlu1 %3348 }
 0x770   : > { %v3347_v16 = vpop.permute.xlu0 %3346  ;;  %v3385_v6 = vsel %vm3383_vm6, %v3382_v3, %v3349_v12  ;;  %v3530_v3 = vld [vmem:[%s5387_s16 + $0x10] sm:$0xff] }
 0x771   : > { %v3384_v11 = vsel %vm3383_vm6, %v3381_v5, %v3347_v16 }
 0x773   : > { %v3357_v51 = vpop.permute.xlu1 %3356 }
 0x774   : > { %v3355_v54 = vpop.permute.xlu0 %3354  ;;  %v3388_v27 = vsel %vm3386_vm7, %v3385_v6, %v3357_v51  ;;  %v3532_v6 = vld [vmem:[%s5387_s16 + $0x20] sm:$0xff] }
 0x775   : > { %v3387_v7 = vsel %vm3386_vm7, %v3384_v11, %v3355_v54  ;;  %v3533_v11 = vld [vmem:[%s5387_s16 + $0x28] sm:$0xff] }
 0x777   : > { %v3365_v43 = vpop.permute.xlu1 %3364 }
 0x778   : > { %v3363_v21 = vpop.permute.xlu0 %3362  ;;  %v3391_v10 = vsel %vm3389_vm8, %v3388_v27, %v3365_v43  ;;  %v3529_v43 = vld [vmem:[%s5387_s16 + $0x8] sm:$0xff]  ;;  %v4361_v27 = vpack.c.bf16 %v3533_v11, %v3532_v6 }
 0x779   : > { %v3390_v9 = vsel %vm3389_vm8, %v3387_v7, %v3363_v21  ;;  %v4353_v2 = vpack.c.bf16 %v3529_v43, %v3528_v26  ;;  %v3531_v21 = vld [vmem:[%s5387_s16 + $0x18] sm:$0xff]  ;;  %v3534_v7 = vld [vmem:[%s5387_s16 + $0x30] sm:$0xff] }
 0x77a   : > { %v4357_v5 = vpack.c.bf16 %v3531_v21, %v3530_v3 }
 0x77b   : > { %v3373_v14 = vpop.permute.xlu1 %3372  ;;  %4354 = vmatprep.subr.bf16.mxu0 %v4353_v2 }
 0x77c   : > { %v3394_v15 = vsel %vm3392_vm9, %v3391_v10, %v3373_v14  ;;  %v3371_v18 = vpop.permute.xlu0 %3370  ;;  %v3535_v10 = vld [vmem:[%s5387_s16 + $0x38] sm:$0xff]  ;;  %s4024_s16 = sshll.u32 %s6081_s27, 8 }
 0x77d   : > { %v3393_v32 = vsel %vm3392_vm9, %v3390_v9, %v3371_v18  ;;  %v4365_v14 = vpack.c.bf16 %v3535_v10, %v3534_v7  ;;  %v3538_v9 = vsub.s32 6, %v5410_v28  ;;  %s5928_s17 = scalar_lea.hbm %s6082_s19, %s4024_s16 }
 0x77e   : > { %4296 = vmatprep.mubr.msk.f32.mxu0 %vm487_vm1, %v3393_v32 }
 0x77f   : > { %4297 = vmatmul.mubr.msk.f32.vlgmr.msra.gmra.mrb[30].mxu0 %vm487_vm1, %v3394_v15  ;;  %v3539_v15 = vrot.slane %v5883_v34, %v3538_v9 }
 0x780   : > { %4356 = vmatpush3.bf16.msra.mxu0 %v4353_v2 }
 0x781   : > { %4358 = vmatprep.subr.bf16.mxu0 %v4357_v5 }
 0x784   : > { %4360 = vmatpush3.bf16.msra.mxu0 %v4357_v5 }
 0x785   : > { %4362 = vmatprep.subr.bf16.mxu0 %v4361_v27 }
 0x788   : > { %4364 = vmatpush3.bf16.msra.mxu0 %v4361_v27 }
 0x789   : > { %4366 = vmatprep.subr.bf16.mxu0 %v4365_v14 }
 0x78c   : > { %4368 = vmatpush3.bf16.msra.mxu0 %v4365_v14 }
 0x852   : > { %v4298_v13 = vpop.f32.mrb[30].mxu0 }
 0x853   : > { %v3481_v0 = vadd.f32 %v4298_v13, %v3402_v62  ;;  %v3475_v49 = vpop.f32.mrb[31].mxu0 }
 0x854   : > { %v3476_v47 = vadd.f32 %v3475_v49, %v3402_v62 }
 0x855   : > { %v5887_v24 = vadd.f32 %v4594_v22, %v3481_v0 }
 0x856   : > { %v5890_v25 = vadd.f32 %v4595_v59, %v3476_v47 }
 0x857   : > { %v3489_v29 = vsel %vm487_vm1, %v5887_v24, 0.0 }
 0x858   : > { %3490 = vadd.xlane.f32.xlu1 %v3489_v29  ;;  %v3486_v61 = vsel %vm487_vm1, %v5890_v25, 0.0 }
 0x859   : > { %3487 = vadd.xlane.f32.xlu0 %v3486_v61 }
 0x8e5   : > { %v3491_v52 = vpop.xlane.xlu1 %3490 }
 0x8e6   : > { %v3493_v35 = vmul.f32 0.03125, %v3491_v52  ;;  %v3488_v30 = vpop.xlane.xlu0 %3487 }
 0x8e7   : > { %v3492_v55 = vmul.f32 0.03125, %v3488_v30  ;;  %v3633_v30 = vsub.s32 7, %v5410_v28 }
 0x8e8   : > { %v3495_v63 = vsub.f32 %v5887_v24, %v3493_v35 }
 0x8e9   : > { %v3494_v46 = vsub.f32 %v5890_v25, %v3492_v55  ;;  %v3634_v55 = vrot.slane %v5883_v34, %v3633_v30 }
 0x8ea   : > { %v3497_v42 = vmul.f32 %v3495_v63, %v3495_v63 }
 0x8eb   : > { %v3496_v41 = vmul.f32 %v3494_v46, %v3494_v46 }
 0x8ec   : > { %v3501_v33 = vsel %vm487_vm1, %v3497_v42, 0.0 }
 0x8ed   : > { %v3498_v31 = vsel %vm487_vm1, %v3496_v41, 0.0 }
 0x8ee   : > { %3499 = vadd.xlane.f32.xlu0 %v3498_v31 }
 0x8f2   : > { %3502 = vadd.xlane.f32.xlu0 %v3501_v33 }
 0x97b   : > { %v3500_v44 = vpop.xlane.xlu0 %3499 }
 0x97c   : > { %v3504_v8 = vmul.f32 0.03125, %v3500_v44 }
 0x97e   : > { %v3506_v4 = vadd.f32 1e-05, %v3504_v8 }
 0x97f   : > { %v3503_v60 = vpop.xlane.xlu0 %3502 }
 0x980   : > { %4585 = vrsqrt.f32 %v3506_v4  ;;  %v3505_v39 = vmul.f32 0.03125, %v3503_v60 }
 0x982   : > { %v3507_v57 = vadd.f32 1e-05, %v3505_v39 }
 0x984   : > { %4587 = vrsqrt.f32 %v3507_v57 }
 0x98a   : > { %v4586_v1 = vpop.eup %4585 }
 0x98b   : > { %v3510_v19 = vmul.f32 %v4586_v1, %v3494_v46 }
 0x98d   : > { %v3516_v12 = vmul.f32 %v3515_v36, %v3510_v19 }
 0x98e   : > { %v4588_v16 = vpop.eup %4587 }
 0x98f   : > { %v3511_v51 = vmul.f32 %v4588_v16, %v3495_v63  ;;  %v3522_v54 = vadd.f32 %v3521_v23, %v3516_v12 }
 0x991   : > { %v3517_v17 = vmul.f32 %v3515_v36, %v3511_v51  ;;  %4307 = vmatprep.mubr.msk.f32.mxu1 %vm487_vm1, %v3522_v54 }
 0x993   : > { %v3523_v56 = vadd.f32 %v3521_v23, %v3517_v17 }
 0x995   : > { %4308 = vmatmul.mubr.msk.f32.vlgmr.msra.gmra.mrb[36].mxu1 %vm487_vm1, %v3523_v56 }
 0xa68   : > { %v4309_v18 = vpop.f32.mrb[36].mxu1 }
 0xa69   : > { %v3618_v32 = vadd.f32 %v4309_v18, %v3539_v15  ;;  %v3612_v20 = vpop.f32.mrb[37].mxu1 }
 0xa6a   : > { %v3613_v62 = vadd.f32 %v3612_v20, %v3539_v15 }
 0xa6b   : > { %v3624_v13 = vmul.f32 0.70710677, %v3618_v32  ;;  %v3622_v61 = vmul.f32 0.5, %v3618_v32 }
 0xa6c   : > { %v3623_v0 = vmul.f32 0.70710677, %v3613_v62  ;;  %v3621_v59 = vmul.f32 0.5, %v3613_v62 }
 0xa6d   : > { %4589 = verf.f32 %v3624_v13 }
 0xa6e   : > { %4591 = verf.f32 %v3623_v0 }
 0xa77   : > { %v4590_v49 = vpop.eup %4589 }
 0xa78   : > { %v4592_v47 = vpop.eup %4591  ;;  %v3628_v22 = vadd.f32 1.0, %v4590_v49 }
 0xa79   : > { %v3627_v29 = vadd.f32 1.0, %v4592_v47 }
 0xa7a   : > { %v3630_v35 = vmul.f32 %v3628_v22, %v3622_v61 }
 0xa7b   : > { %v3629_v52 = vmul.f32 %v3627_v29, %v3621_v59 }
 0xa7d   : > { %4326 = vmatprep.mubr.msk.f32.mxu0 %vm3635_vm10, %v3629_v52 }
 0xa7e   : > { %4327 = vmatmul.mubr.msk.f32.vlgmr.msra.gmra.mrb[32].mxu0 %vm3635_vm10, %v3630_v35 }
 0xb51   : > { %v4328_v63 = vpop.f32.mrb[32].mxu0 }
 0xb52   : > { %v3714_v46 = vadd.f32 %v4328_v63, %v3634_v55  ;;  %v3708_v41 = vpop.f32.mrb[33].mxu0 }
 0xb53   : > { %v3709_v31 = vadd.f32 %v3708_v41, %v3634_v55 }
 0xb54   : > { %v3718_v42 = vadd.f32 %v3714_v46, %v5887_v24 }
 0xb55   : > { %v3717_v33 = vadd.f32 %v3709_v31, %v5890_v25 }
 0xb56   : > { %3720 = vst.msk [vmem:[%s5395_s5 + $0x8] sm:$0xff] %vm487_vm1, %v3718_v42 }
 0xb57   : > { %3719 = vst.msk [vmem:[%s5395_s5] sm:$0xff] %vm487_vm1, %v3717_v33 }
 0xb58   : > { %4789 = shalt.err (!%p4786_p12)
}
 0xb59   : > { %s4790_s5 = scalar_lea.hbm %s5928_s17, 256  ;;  %s4794_s12 = scalar_lea.hbm %s6082_s19, 512 }
 0xb5a   : > { %p4791_p6 = scmp.ne.s32.totalorder %s5928_s17, %s4790_s5  ;;  %p4795_p9 = scmp.lt.u32.totalorder %s5928_s17, %s6082_s19 }
 0xb5b   : > { %p4796_p1 = scmp.lt.u32.totalorder %s4794_s12, %s4790_s5  ;;  %p4798_p0 = scmp.lt.u32.totalorder %s4790_s5, %s5928_s17 }
 0xb5c   : > { %p4792_p10 = pnand %p4791_p6, %p6083_p2 }
 0xb5d   : > { %p4797_p5 = por %p4796_p1, %p4795_p9 }
 0xb5e   : > { %p4793_p3 = pneg %p4792_p10 }
 0xb5f   : > { %p4799_p7 = por %p4798_p0, %p4797_p5 }
 0xb61   : > { %p4800_p4 = pnand %p4799_p7, %p4793_p3 }
 0xb63   : > { %4803 = shalt.err (!%p4800_p4)
}
 0xb64   : > { %s4939_s1 = smov 128  }
 0xb65   : > { %4381 = dma.vmem_to_hbm [thread:$0]  (%p6083_p2), %s5931_s21, 256, %s5928_s17, %s3722_s18, %s4939_s1, %s4939_s1, %s4932_s26  }
 0xb66 PF: > { %s6084_s27 = sld [smem:[#allocation31_spill]]  ;;  %p4407_p8 = scmp.ge.s32.totalorder %s4910_s7, 2 }
 0xb67   : > { %s3750_s16 = sand.u32 1, %s4882_s24  }
 0xb68   : > { %s3751_s30 = scalar_lea.sflag [#allocation4], %s3750_s16 }
 0xb6c   : > { %p6085_p13 = scmp.ne.s32.totalorder %s6084_s27, 0 }
 0xb6e   : > { %p4403_p11 = pnand %p4407_p8, %p6085_p13 }
 0xb70   : > { %4865 = dma.done.wait (!%p4403_p11), %s3751_s30, 256  }
 0xb71   : > { %4867 = vsyncadd (!%p4403_p11), %s3751_s30, 4294967040  ;;  %s31_s7 = sadd.s32 1, %s4910_s7   ;;  %s6086_s3 = sld [smem:[#allocation19_spill]] }
 0xb72   : > { %p28_p12 = scmp.ge.s32.totalorder %s31_s7, 6   ;;  %s6087_s23 = sld [smem:[#allocation28_spill]] }
 0xb73   : > { %s6088_s13 = sld [smem:[#allocation20_spill]]  ;;  %s6089_s26 = sld [smem:[#allocation30_spill]] }
 0xb74   : > { %s6090_s28 = sld [smem:[#allocation23_spill]]  ;;  %s6091_s11 = sld [smem:[#allocation26_spill]] }
 0xb75   : > { %s6092_s30 = sld [smem:[#allocation27_spill]]  ;;  %s6093_s21 = smov %s4874_s22 }
 0xb76   : > { %s6095_s24 = smov %s4886_s25  ;;  %s6097_s27 = smov %s4902_s29 }
 0xb77   : > { %s6094_s22 = smov %s6086_s3  ;;  %30 = sbr.rel (!%p28_p12) target bundleno = 21 (0x15), region = 154 }
 0xb79   : > { %s6096_s25 = smov %s6088_s13 }
 0xb7a   : > { %s6098_s29 = smov %s6091_s11 }
 0xb7e   :  { %3756 = vsyncpa [#allocation3], 1 }
 0xb7f   :  { %3758 = vsyncpa [#allocation3 + $0x1], 1 }
 0xb80   :  { %3759 = vsyncpa [#allocation6], 1 }
 0xb81   :  { %3761 = vsyncpa [#allocation6 + $0x1], 1 }
 0xb82   :  { %3762 = vsyncpa [#allocation9], 1 }
 0xb83   :  { %3764 = vsyncpa [#allocation9 + $0x1], 1 }
 0xb84   :  { %3765 = vsyncpa [#allocation12], 1 }
 0xb85   :  { %3767 = vsyncpa [#allocation12 + $0x1], 1 }
 0xb86   :  { %3768 = vsyncpa [#allocation4], 1 }
 0xb87   :  { %3770 = vsyncpa [#allocation4 + $0x1], 1 }

</bundles_post_ra>
